<compile_context>
chip_gen: v5e
topology: v5e:2x2
jax: 0.10.0
libtpu: 0.0.40
codegen_flags: <defaults>
</compile_context>

<pallas_src>
import jax
import jax.numpy as jnp
import numpy as np
from jax.experimental import pallas as pl
from jax.experimental.pallas import tpu as pltpu


# ----------------------------------------------------------------------------
# Fused bottleneck kernel: 1x1a -> 3x3 -> 1x1c (+ shortcut) -> ReLU
# ----------------------------------------------------------------------------
def fused_bottleneck(x2d, wa, ba, w3, b3, wc, bc, wsc=None, bsc=None, *, N, H, W):
    """One ResNet bottleneck as a single fused Pallas kernel.

    x2d : (N*H*W, Cin) bf16 activations (NHWC flattened per image).
    wa  : (Cin, Cmid)     bf16  1x1 reduce     ba : (Cmid,) f32
    w3  : (3,3,Cmid,Cmid) bf16  3x3 conv       b3 : (Cmid,) f32
    wc  : (Cmid, Cout)    bf16  1x1 expand     bc : (Cout,) f32
    wsc : (Cin, Cout)     bf16  1x1 projection shortcut (BTNK1) or None
                                 (identity shortcut, BTNK2).
    Returns (N*H*W, Cout) bf16.
    """
    HW = H * W
    Cin = x2d.shape[1]
    Cmid = wa.shape[1]
    Cout = wc.shape[1]
    has_proj = wsc is not None
    PW = ((W + 2 + 7) // 8) * 8          # padded-plane width, sublane aligned
    L = H * PW

    ba2 = ba.reshape(1, Cmid)
    b32 = b3.reshape(1, Cmid)
    bc2 = bc.reshape(1, Cout)

    def kernel(*refs):
        if has_proj:
            (x_ref, wa_ref, ba_ref, w3_ref, b3_ref, wc_ref, bc_ref,
             wsc_ref, bsc_ref, o_ref, pm_ref) = refs
        else:
            (x_ref, wa_ref, ba_ref, w3_ref, b3_ref, wc_ref, bc_ref,
             o_ref, pm_ref) = refs

        xb = x_ref[...]                                        # (HW, Cin) bf16

        # ---- 1x1 reduce + folded BN + ReLU (bf16 MXU, f32 accumulate) -------
        mid = jnp.dot(xb, wa_ref[...], preferred_element_type=jnp.float32)
        mid = jnp.maximum(mid + ba_ref[...], 0.0).astype(jnp.bfloat16)

        # ---- build the zero-padded mid plane in a VMEM scratch --------------
        pm_ref[...] = jnp.zeros_like(pm_ref)
        pm_ref[1:H + 1, 1:W + 1, :] = mid.reshape(H, W, Cmid)

        # ---- 3x3 conv: contiguous per-dy slabs, per-dx flat accumulators ----
        acc0 = acc1 = acc2 = None
        for dy in range(3):
            rows = pm_ref[dy:dy + H, :, :].reshape(L, Cmid)    # contiguous slab
            t0 = jnp.dot(rows, w3_ref[dy, 0], preferred_element_type=jnp.float32)
            t1 = jnp.dot(rows, w3_ref[dy, 1], preferred_element_type=jnp.float32)
            t2 = jnp.dot(rows, w3_ref[dy, 2], preferred_element_type=jnp.float32)
            acc0 = t0 if acc0 is None else acc0 + t0
            acc1 = t1 if acc1 is None else acc1 + t1
            acc2 = t2 if acc2 is None else acc2 + t2
        conv = (acc0.reshape(H, PW, Cmid)[:, 0:W, :]
                + acc1.reshape(H, PW, Cmid)[:, 1:W + 1, :]
                + acc2.reshape(H, PW, Cmid)[:, 2:W + 2, :])
        h3 = jnp.maximum(conv + b3_ref[...], 0.0).astype(jnp.bfloat16)
        m2 = h3.reshape(HW, Cmid)

        # ---- 1x1 expand + folded BN, shortcut add, final ReLU ---------------
        y = jnp.dot(m2, wc_ref[...], preferred_element_type=jnp.float32)
        y = y + bc_ref[...]
        if has_proj:
            sc = jnp.dot(xb, wsc_ref[...], preferred_element_type=jnp.float32)
            sc = sc + bsc_ref[...]
        else:
            sc = xb.astype(jnp.float32)
        o_ref[...] = jnp.maximum(y + sc, 0.0).astype(o_ref.dtype)

    in_specs = [
        pl.BlockSpec((HW, Cin), lambda n: (n, 0)),
        pl.BlockSpec((Cin, Cmid), lambda n: (0, 0)),
        pl.BlockSpec((1, Cmid), lambda n: (0, 0)),
        pl.BlockSpec((3, 3, Cmid, Cmid), lambda n: (0, 0, 0, 0)),
        pl.BlockSpec((1, Cmid), lambda n: (0, 0)),
        pl.BlockSpec((Cmid, Cout), lambda n: (0, 0)),
        pl.BlockSpec((1, Cout), lambda n: (0, 0)),
    ]
    args = [x2d, wa, ba2, w3, b32, wc, bc2]
    if has_proj:
        in_specs += [pl.BlockSpec((Cin, Cout), lambda n: (0, 0)),
                     pl.BlockSpec((1, Cout), lambda n: (0, 0))]
        args += [wsc, bsc.reshape(1, Cout)]

    return pl.pallas_call(
        kernel,
        out_shape=jax.ShapeDtypeStruct((N * HW, Cout), jnp.bfloat16),
        grid=(N,),
        in_specs=in_specs,
        out_specs=pl.BlockSpec((HW, Cout), lambda n: (n, 0)),
        scratch_shapes=[pltpu.VMEM((H + 2, PW, Cmid), jnp.bfloat16)],
        compiler_params=pltpu.CompilerParams(dimension_semantics=("parallel",)),
    )(*args)


# ----------------------------------------------------------------------------
# Stage2 built on the fused kernel (glue: free reshapes + one strided slice)
# ----------------------------------------------------------------------------
def stage2(x, params, S):
    """x: (N, H, W, Cin) bf16 NHWC."""
    N, H, W, Cin = x.shape
    # TODO(synk): fold the stride-S subsample into the kernel's DMA (strided
    #             block index_map) instead of this wrapper-side slice.
    xs = x[:, ::S, ::S, :]
    Ho, Wo = xs.shape[1], xs.shape[2]
    p = params['btnk1']
    h = fused_bottleneck(xs.reshape(N * Ho * Wo, Cin),
                         p['w1a'], p['b1a'], p['w1b'], p['b1b'],
                         p['w1c'], p['b1c'],
                         wsc=p['w2'], bsc=p['b2'], N=N, H=Ho, W=Wo)
    for name in ('btnk2', 'btnk3', 'btnk4'):
        p = params[name]
        h = fused_bottleneck(h, p['wa'], p['ba'], p['wb'], p['bb'],
                             p['wc'], p['bc'], N=N, H=Ho, W=Wo)
    return h.reshape(N, Ho, Wo, -1)


# ----------------------------------------------------------------------------
# Deterministic parameter init (Conv + folded eval-mode BatchNorm)
# ----------------------------------------------------------------------------
def init_conv_bn(key, cin, cout, k):
    keys = jax.random.split(key, 6)
    w = 0.1 * jax.random.normal(keys[0], (k, k, cin, cout), jnp.float32)
    b = 0.1 * jax.random.normal(keys[1], (cout,), jnp.float32)
    gamma = 1.0 + 0.1 * jax.random.normal(keys[2], (cout,), jnp.float32)
    beta = 0.1 * jax.random.normal(keys[3], (cout,), jnp.float32)
    mean = 0.1 * jax.random.normal(keys[4], (cout,), jnp.float32)
    var = 1.0 + 0.1 * jax.random.uniform(keys[5], (cout,), jnp.float32)
    eps = 1e-5
    s = gamma / jnp.sqrt(var + eps)
    wf = w * s                       # fold BN scale into the conv weight
    bf = (b - mean) * s + beta       # fold BN shift into the conv bias
    if k == 1:
        wf = wf.reshape(cin, cout)
    return wf.astype(jnp.bfloat16), bf.astype(jnp.float32)


def init_btnk1(key, cin, c1):
    k = jax.random.split(key, 4)
    p = {}
    p['w1a'], p['b1a'] = init_conv_bn(k[0], cin, c1, 1)
    p['w1b'], p['b1b'] = init_conv_bn(k[1], c1, c1, 3)
    p['w1c'], p['b1c'] = init_conv_bn(k[2], c1, 4 * c1, 1)
    p['w2'], p['b2'] = init_conv_bn(k[3], cin, 4 * c1, 1)
    return p


def init_btnk2(key, raw):
    k = jax.random.split(key, 3)
    mid = raw // 4
    p = {}
    p['wa'], p['ba'] = init_conv_bn(k[0], raw, mid, 1)
    p['wb'], p['bb'] = init_conv_bn(k[1], mid, mid, 3)
    p['wc'], p['bc'] = init_conv_bn(k[2], mid, raw, 1)
    return p


# ----------------------------------------------------------------------------
# Pure-JAX reference with matching precision (bf16 operands, f32 accumulate)
# ----------------------------------------------------------------------------
def ref_conv(x, w, b, stride=1, padding=0):
    if w.ndim == 2:
        w = w.reshape(1, 1, *w.shape)
    y = jax.lax.conv_general_dilated(
        x, w, (stride, stride), ((padding, padding), (padding, padding)),
        dimension_numbers=('NHWC', 'HWIO', 'NHWC'),
        preferred_element_type=jnp.float32)
    return y + b.reshape(1, 1, 1, -1)


def ref_btnk1(x, p, S):
    h = jnp.maximum(ref_conv(x, p['w1a'], p['b1a'], stride=S), 0.0).astype(jnp.bfloat16)
    h = jnp.maximum(ref_conv(h, p['w1b'], p['b1b'], padding=1), 0.0).astype(jnp.bfloat16)
    br1 = ref_conv(h, p['w1c'], p['b1c'])
    br2 = ref_conv(x, p['w2'], p['b2'], stride=S)
    return jnp.maximum(br1 + br2, 0.0).astype(jnp.bfloat16)


def ref_btnk2(x, p):
    h = jnp.maximum(ref_conv(x, p['wa'], p['ba']), 0.0).astype(jnp.bfloat16)
    h = jnp.maximum(ref_conv(h, p['wb'], p['bb'], padding=1), 0.0).astype(jnp.bfloat16)
    h = ref_conv(h, p['wc'], p['bc'])
    return jnp.maximum(x.astype(jnp.float32) + h, 0.0).astype(jnp.bfloat16)


def ref_stage2(x, params, S):
    h = ref_btnk1(x, params['btnk1'], S)
    h = ref_btnk2(h, params['btnk2'])
    h = ref_btnk2(h, params['btnk3'])
    h = ref_btnk2(h, params['btnk4'])
    return h


# ----------------------------------------------------------------------------
if __name__ == "__main__":
    # Scaled-down Stage2 (original: in_channels=256, C1=128, S=2 -> 512-ch BTNK2s)
    IN_CH, C1, S = 16, 8, 2
    N, H, W = 2, 16, 16

    key = jax.random.PRNGKey(0)
    kx, k1, k2, k3, k4 = jax.random.split(key, 5)

    x_nchw = jax.random.normal(kx, (N, IN_CH, H, W), jnp.float32)   # PyTorch layout
    x = jnp.transpose(x_nchw, (0, 2, 3, 1)).astype(jnp.bfloat16)    # NCHW -> NHWC

    params = {
        'btnk1': init_btnk1(k1, IN_CH, C1),
        'btnk2': init_btnk2(k2, 4 * C1),
        'btnk3': init_btnk2(k3, 4 * C1),
        'btnk4': init_btnk2(k4, 4 * C1),
    }

    out = jax.block_until_ready(stage2(x, params, S))

    assert out.shape == (N, H // S, W // S, 4 * C1), out.shape
    ref = ref_stage2(x, params, S)
    np.testing.assert_allclose(np.asarray(out.astype(jnp.float32)),
                               np.asarray(ref.astype(jnp.float32)),
                               rtol=2e-2, atol=2e-2)
    print("KERNEL_OK")
</pallas_src>

<mosaic_0001>
module attributes {stable_mosaic.version = 11 : i64} {
  func.func @kernel(%arg0: i32, %arg1: memref<64x16xbf16, #tpu.memory_space<vmem>>, %arg2: memref<16x8xbf16, #tpu.memory_space<vmem>>, %arg3: memref<1x8xf32, #tpu.memory_space<vmem>>, %arg4: memref<3x3x8x8xbf16, #tpu.memory_space<vmem>>, %arg5: memref<1x8xf32, #tpu.memory_space<vmem>>, %arg6: memref<8x32xbf16, #tpu.memory_space<vmem>>, %arg7: memref<1x32xf32, #tpu.memory_space<vmem>>, %arg8: memref<16x32xbf16, #tpu.memory_space<vmem>>, %arg9: memref<1x32xf32, #tpu.memory_space<vmem>>, %arg10: memref<64x32xbf16, #tpu.memory_space<vmem>>, %arg11: memref<10x16x8xbf16, #tpu.memory_space<vmem>>) attributes {dimension_semantics = [#tpu.dimension_semantics<parallel>], iteration_bounds = array<i64: 2>, scalar_prefetch = 0 : i64, scratch_operands = 1 : i64, tpu.core_type = #tpu.core_type<tc>, window_params = [{transform_indices = @transform_0, window_bounds = array<i64: 64, 16>}, {pipeline_mode = #tpu.pipeline_mode<synchronous>, transform_indices = @transform_1, window_bounds = array<i64: 16, 8>}, {pipeline_mode = #tpu.pipeline_mode<synchronous>, transform_indices = @transform_2, window_bounds = array<i64: 1, 8>}, {pipeline_mode = #tpu.pipeline_mode<synchronous>, transform_indices = @transform_3, window_bounds = array<i64: 3, 3, 8, 8>}, {pipeline_mode = #tpu.pipeline_mode<synchronous>, transform_indices = @transform_4, window_bounds = array<i64: 1, 8>}, {pipeline_mode = #tpu.pipeline_mode<synchronous>, transform_indices = @transform_5, window_bounds = array<i64: 8, 32>}, {pipeline_mode = #tpu.pipeline_mode<synchronous>, transform_indices = @transform_6, window_bounds = array<i64: 1, 32>}, {pipeline_mode = #tpu.pipeline_mode<synchronous>, transform_indices = @transform_7, window_bounds = array<i64: 16, 32>}, {pipeline_mode = #tpu.pipeline_mode<synchronous>, transform_indices = @transform_8, window_bounds = array<i64: 1, 32>}, {transform_indices = @transform_9, window_bounds = array<i64: 64, 32>}]} {
    %c0 = arith.constant 0 : index
    %c0_0 = arith.constant 0 : index
    %0 = vector.load %arg1[%c0, %c0_0] : memref<64x16xbf16, #tpu.memory_space<vmem>>, vector<64x16xbf16>
    %c0_1 = arith.constant 0 : index
    %c0_2 = arith.constant 0 : index
    %1 = vector.load %arg2[%c0_1, %c0_2] : memref<16x8xbf16, #tpu.memory_space<vmem>>, vector<16x8xbf16>
    %cst = arith.constant dense<0.000000e+00> : vector<64x8xf32>
    %2 = tpu.matmul %0, %1, %cst {dimension_numbers = #tpu.dot_dimension_numbers<[1], [0], [0], [1], [0, 0, 1, 1], [], []>} : vector<64x16xbf16>, vector<16x8xbf16>, vector<64x8xf32> -> vector<64x8xf32>
    %c0_3 = arith.constant 0 : index
    %c0_4 = arith.constant 0 : index
    %3 = vector.load %arg3[%c0_3, %c0_4] : memref<1x8xf32, #tpu.memory_space<vmem>>, vector<1x8xf32>
    %4 = vector.broadcast %3 : vector<1x8xf32> to vector<64x8xf32>
    %5 = arith.addf %2, %4 : vector<64x8xf32>
    %cst_5 = arith.constant 0.000000e+00 : f32
    %6 = vector.broadcast %cst_5 : f32 to vector<64x8xf32>
    %7 = arith.maximumf %5, %6 : vector<64x8xf32>
    %8 = arith.truncf %7 : vector<64x8xf32> to vector<64x8xbf16>
    %cst_6 = arith.constant 0.000000e+00 : bf16
    %9 = vector.broadcast %cst_6 : bf16 to vector<10x16x8xbf16>
    %c0_7 = arith.constant 0 : index
    %c0_8 = arith.constant 0 : index
    %c0_9 = arith.constant 0 : index
    %10 = vector.load %arg11[%c0_7, %c0_8, %c0_9] : memref<10x16x8xbf16, #tpu.memory_space<vmem>>, vector<10x16x8xbf16>
    tpu.vector_store %arg11[%c0_7, %c0_8, %c0_9], %9 {strides = array<i32>} : memref<10x16x8xbf16, #tpu.memory_space<vmem>>, vector<10x16x8xbf16>,
    %11 = vector.shape_cast %8 : vector<64x8xbf16> to vector<8x8x8xbf16>
    %c1 = arith.constant 1 : index
    %c1_10 = arith.constant 1 : index
    %c0_11 = arith.constant 0 : index
    %12 = vector.load %arg11[%c1, %c1_10, %c0_11] : memref<10x16x8xbf16, #tpu.memory_space<vmem>>, vector<8x8x8xbf16>
    tpu.vector_store %arg11[%c1, %c1_10, %c0_11], %11 {strides = array<i32>} : memref<10x16x8xbf16, #tpu.memory_space<vmem>>, vector<8x8x8xbf16>,
    %c0_12 = arith.constant 0 : index
    %c0_13 = arith.constant 0 : index
    %c0_14 = arith.constant 0 : index
    %13 = vector.load %arg11[%c0_12, %c0_13, %c0_14] : memref<10x16x8xbf16, #tpu.memory_space<vmem>>, vector<8x16x8xbf16>
    %14 = vector.shape_cast %13 : vector<8x16x8xbf16> to vector<128x8xbf16>
    %c0_15 = arith.constant 0 : index
    %c0_16 = arith.constant 0 : index
    %c0_17 = arith.constant 0 : index
    %c0_18 = arith.constant 0 : index
    %15 = vector.load %arg4[%c0_15, %c0_16, %c0_17, %c0_18] : memref<3x3x8x8xbf16, #tpu.memory_space<vmem>>, vector<1x1x8x8xbf16>
    %16 = vector.shape_cast %15 : vector<1x1x8x8xbf16> to vector<8x8xbf16>
    %cst_19 = arith.constant dense<0.000000e+00> : vector<128x8xf32>
    %17 = tpu.matmul %14, %16, %cst_19 {dimension_numbers = #tpu.dot_dimension_numbers<[1], [0], [0], [1], [0, 0, 1, 1], [], []>} : vector<128x8xbf16>, vector<8x8xbf16>, vector<128x8xf32> -> vector<128x8xf32>
    %c0_20 = arith.constant 0 : index
    %c1_21 = arith.constant 1 : index
    %c0_22 = arith.constant 0 : index
    %c0_23 = arith.constant 0 : index
    %18 = vector.load %arg4[%c0_20, %c1_21, %c0_22, %c0_23] : memref<3x3x8x8xbf16, #tpu.memory_space<vmem>>, vector<1x1x8x8xbf16>
    %19 = vector.shape_cast %18 : vector<1x1x8x8xbf16> to vector<8x8xbf16>
    %cst_24 = arith.constant dense<0.000000e+00> : vector<128x8xf32>
    %20 = tpu.matmul %14, %19, %cst_24 {dimension_numbers = #tpu.dot_dimension_numbers<[1], [0], [0], [1], [0, 0, 1, 1], [], []>} : vector<128x8xbf16>, vector<8x8xbf16>, vector<128x8xf32> -> vector<128x8xf32>
    %c0_25 = arith.constant 0 : index
    %c2 = arith.constant 2 : index
    %c0_26 = arith.constant 0 : index
    %c0_27 = arith.constant 0 : index
    %21 = vector.load %arg4[%c0_25, %c2, %c0_26, %c0_27] : memref<3x3x8x8xbf16, #tpu.memory_space<vmem>>, vector<1x1x8x8xbf16>
    %22 = vector.shape_cast %21 : vector<1x1x8x8xbf16> to vector<8x8xbf16>
    %cst_28 = arith.constant dense<0.000000e+00> : vector<128x8xf32>
    %23 = tpu.matmul %14, %22, %cst_28 {dimension_numbers = #tpu.dot_dimension_numbers<[1], [0], [0], [1], [0, 0, 1, 1], [], []>} : vector<128x8xbf16>, vector<8x8xbf16>, vector<128x8xf32> -> vector<128x8xf32>
    %c1_29 = arith.constant 1 : index
    %c0_30 = arith.constant 0 : index
    %c0_31 = arith.constant 0 : index
    %24 = vector.load %arg11[%c1_29, %c0_30, %c0_31] : memref<10x16x8xbf16, #tpu.memory_space<vmem>>, vector<8x16x8xbf16>
    %25 = vector.shape_cast %24 : vector<8x16x8xbf16> to vector<128x8xbf16>
    %c1_32 = arith.constant 1 : index
    %c0_33 = arith.constant 0 : index
    %c0_34 = arith.constant 0 : index
    %c0_35 = arith.constant 0 : index
    %26 = vector.load %arg4[%c1_32, %c0_33, %c0_34, %c0_35] : memref<3x3x8x8xbf16, #tpu.memory_space<vmem>>, vector<1x1x8x8xbf16>
    %27 = vector.shape_cast %26 : vector<1x1x8x8xbf16> to vector<8x8xbf16>
    %cst_36 = arith.constant dense<0.000000e+00> : vector<128x8xf32>
    %28 = tpu.matmul %25, %27, %cst_36 {dimension_numbers = #tpu.dot_dimension_numbers<[1], [0], [0], [1], [0, 0, 1, 1], [], []>} : vector<128x8xbf16>, vector<8x8xbf16>, vector<128x8xf32> -> vector<128x8xf32>
    %c1_37 = arith.constant 1 : index
    %c1_38 = arith.constant 1 : index
    %c0_39 = arith.constant 0 : index
    %c0_40 = arith.constant 0 : index
    %29 = vector.load %arg4[%c1_37, %c1_38, %c0_39, %c0_40] : memref<3x3x8x8xbf16, #tpu.memory_space<vmem>>, vector<1x1x8x8xbf16>
    %30 = vector.shape_cast %29 : vector<1x1x8x8xbf16> to vector<8x8xbf16>
    %cst_41 = arith.constant dense<0.000000e+00> : vector<128x8xf32>
    %31 = tpu.matmul %25, %30, %cst_41 {dimension_numbers = #tpu.dot_dimension_numbers<[1], [0], [0], [1], [0, 0, 1, 1], [], []>} : vector<128x8xbf16>, vector<8x8xbf16>, vector<128x8xf32> -> vector<128x8xf32>
    %c1_42 = arith.constant 1 : index
    %c2_43 = arith.constant 2 : index
    %c0_44 = arith.constant 0 : index
    %c0_45 = arith.constant 0 : index
    %32 = vector.load %arg4[%c1_42, %c2_43, %c0_44, %c0_45] : memref<3x3x8x8xbf16, #tpu.memory_space<vmem>>, vector<1x1x8x8xbf16>
    %33 = vector.shape_cast %32 : vector<1x1x8x8xbf16> to vector<8x8xbf16>
    %cst_46 = arith.constant dense<0.000000e+00> : vector<128x8xf32>
    %34 = tpu.matmul %25, %33, %cst_46 {dimension_numbers = #tpu.dot_dimension_numbers<[1], [0], [0], [1], [0, 0, 1, 1], [], []>} : vector<128x8xbf16>, vector<8x8xbf16>, vector<128x8xf32> -> vector<128x8xf32>
    %35 = arith.addf %17, %28 : vector<128x8xf32>
    %36 = arith.addf %20, %31 : vector<128x8xf32>
    %37 = arith.addf %23, %34 : vector<128x8xf32>
    %c2_47 = arith.constant 2 : index
    %c0_48 = arith.constant 0 : index
    %c0_49 = arith.constant 0 : index
    %38 = vector.load %arg11[%c2_47, %c0_48, %c0_49] : memref<10x16x8xbf16, #tpu.memory_space<vmem>>, vector<8x16x8xbf16>
    %39 = vector.shape_cast %38 : vector<8x16x8xbf16> to vector<128x8xbf16>
    %c2_50 = arith.constant 2 : index
    %c0_51 = arith.constant 0 : index
    %c0_52 = arith.constant 0 : index
    %c0_53 = arith.constant 0 : index
    %40 = vector.load %arg4[%c2_50, %c0_51, %c0_52, %c0_53] : memref<3x3x8x8xbf16, #tpu.memory_space<vmem>>, vector<1x1x8x8xbf16>
    %41 = vector.shape_cast %40 : vector<1x1x8x8xbf16> to vector<8x8xbf16>
    %cst_54 = arith.constant dense<0.000000e+00> : vector<128x8xf32>
    %42 = tpu.matmul %39, %41, %cst_54 {dimension_numbers = #tpu.dot_dimension_numbers<[1], [0], [0], [1], [0, 0, 1, 1], [], []>} : vector<128x8xbf16>, vector<8x8xbf16>, vector<128x8xf32> -> vector<128x8xf32>
    %c2_55 = arith.constant 2 : index
    %c1_56 = arith.constant 1 : index
    %c0_57 = arith.constant 0 : index
    %c0_58 = arith.constant 0 : index
    %43 = vector.load %arg4[%c2_55, %c1_56, %c0_57, %c0_58] : memref<3x3x8x8xbf16, #tpu.memory_space<vmem>>, vector<1x1x8x8xbf16>
    %44 = vector.shape_cast %43 : vector<1x1x8x8xbf16> to vector<8x8xbf16>
    %cst_59 = arith.constant dense<0.000000e+00> : vector<128x8xf32>
    %45 = tpu.matmul %39, %44, %cst_59 {dimension_numbers = #tpu.dot_dimension_numbers<[1], [0], [0], [1], [0, 0, 1, 1], [], []>} : vector<128x8xbf16>, vector<8x8xbf16>, vector<128x8xf32> -> vector<128x8xf32>
    %c2_60 = arith.constant 2 : index
    %c2_61 = arith.constant 2 : index
    %c0_62 = arith.constant 0 : index
    %c0_63 = arith.constant 0 : index
    %46 = vector.load %arg4[%c2_60, %c2_61, %c0_62, %c0_63] : memref<3x3x8x8xbf16, #tpu.memory_space<vmem>>, vector<1x1x8x8xbf16>
    %47 = vector.shape_cast %46 : vector<1x1x8x8xbf16> to vector<8x8xbf16>
    %cst_64 = arith.constant dense<0.000000e+00> : vector<128x8xf32>
    %48 = tpu.matmul %39, %47, %cst_64 {dimension_numbers = #tpu.dot_dimension_numbers<[1], [0], [0], [1], [0, 0, 1, 1], [], []>} : vector<128x8xbf16>, vector<8x8xbf16>, vector<128x8xf32> -> vector<128x8xf32>
    %49 = arith.addf %35, %42 : vector<128x8xf32>
    %50 = arith.addf %36, %45 : vector<128x8xf32>
    %51 = arith.addf %37, %48 : vector<128x8xf32>
    %52 = vector.shape_cast %49 : vector<128x8xf32> to vector<8x16x8xf32>
    %53 = vector.extract_strided_slice %52 {offsets = [0, 0, 0], sizes = [8, 8, 8], strides = [1, 1, 1]} : vector<8x16x8xf32> to vector<8x8x8xf32>
    %54 = vector.shape_cast %50 : vector<128x8xf32> to vector<8x16x8xf32>
    %55 = vector.extract_strided_slice %54 {offsets = [0, 1, 0], sizes = [8, 8, 8], strides = [1, 1, 1]} : vector<8x16x8xf32> to vector<8x8x8xf32>
    %56 = arith.addf %53, %55 : vector<8x8x8xf32>
    %57 = vector.shape_cast %51 : vector<128x8xf32> to vector<8x16x8xf32>
    %58 = vector.extract_strided_slice %57 {offsets = [0, 2, 0], sizes = [8, 8, 8], strides = [1, 1, 1]} : vector<8x16x8xf32> to vector<8x8x8xf32>
    %59 = arith.addf %56, %58 : vector<8x8x8xf32>
    %c0_65 = arith.constant 0 : index
    %c0_66 = arith.constant 0 : index
    %60 = vector.load %arg5[%c0_65, %c0_66] : memref<1x8xf32, #tpu.memory_space<vmem>>, vector<1x8xf32>
    %61 = vector.shape_cast %60 : vector<1x8xf32> to vector<1x1x8xf32>
    %62 = vector.broadcast %61 : vector<1x1x8xf32> to vector<8x8x8xf32>
    %63 = arith.addf %59, %62 : vector<8x8x8xf32>
    %cst_67 = arith.constant 0.000000e+00 : f32
    %64 = vector.broadcast %cst_67 : f32 to vector<8x8x8xf32>
    %65 = arith.maximumf %63, %64 : vector<8x8x8xf32>
    %66 = arith.truncf %65 : vector<8x8x8xf32> to vector<8x8x8xbf16>
    %67 = vector.shape_cast %66 : vector<8x8x8xbf16> to vector<64x8xbf16>
    %c0_68 = arith.constant 0 : index
    %c0_69 = arith.constant 0 : index
    %68 = vector.load %arg6[%c0_68, %c0_69] : memref<8x32xbf16, #tpu.memory_space<vmem>>, vector<8x32xbf16>
    %cst_70 = arith.constant dense<0.000000e+00> : vector<64x32xf32>
    %69 = tpu.matmul %67, %68, %cst_70 {dimension_numbers = #tpu.dot_dimension_numbers<[1], [0], [0], [1], [0, 0, 1, 1], [], []>} : vector<64x8xbf16>, vector<8x32xbf16>, vector<64x32xf32> -> vector<64x32xf32>
    %c0_71 = arith.constant 0 : index
    %c0_72 = arith.constant 0 : index
    %70 = vector.load %arg7[%c0_71, %c0_72] : memref<1x32xf32, #tpu.memory_space<vmem>>, vector<1x32xf32>
    %71 = vector.broadcast %70 : vector<1x32xf32> to vector<64x32xf32>
    %72 = arith.addf %69, %71 : vector<64x32xf32>
    %c0_73 = arith.constant 0 : index
    %c0_74 = arith.constant 0 : index
    %73 = vector.load %arg8[%c0_73, %c0_74] : memref<16x32xbf16, #tpu.memory_space<vmem>>, vector<16x32xbf16>
    %cst_75 = arith.constant dense<0.000000e+00> : vector<64x32xf32>
    %74 = tpu.matmul %0, %73, %cst_75 {dimension_numbers = #tpu.dot_dimension_numbers<[1], [0], [0], [1], [0, 0, 1, 1], [], []>} : vector<64x16xbf16>, vector<16x32xbf16>, vector<64x32xf32> -> vector<64x32xf32>
    %c0_76 = arith.constant 0 : index
    %c0_77 = arith.constant 0 : index
    %75 = vector.load %arg9[%c0_76, %c0_77] : memref<1x32xf32, #tpu.memory_space<vmem>>, vector<1x32xf32>
    %76 = vector.broadcast %75 : vector<1x32xf32> to vector<64x32xf32>
    %77 = arith.addf %74, %76 : vector<64x32xf32>
    %78 = arith.addf %72, %77 : vector<64x32xf32>
    %cst_78 = arith.constant 0.000000e+00 : f32
    %79 = vector.broadcast %cst_78 : f32 to vector<64x32xf32>
    %80 = arith.maximumf %78, %79 : vector<64x32xf32>
    %81 = arith.truncf %80 : vector<64x32xf32> to vector<64x32xbf16>
    %c0_79 = arith.constant 0 : index
    %c0_80 = arith.constant 0 : index
    %82 = vector.load %arg10[%c0_79, %c0_80] : memref<64x32xbf16, #tpu.memory_space<vmem>>, vector<64x32xbf16>
    tpu.vector_store %arg10[%c0_79, %c0_80], %81 {strides = array<i32>} : memref<64x32xbf16, #tpu.memory_space<vmem>>, vector<64x32xbf16>,
    return
  }
  func.func @transform_0(%arg0: i32) -> (i32, i32) {
    %c0_i32 = arith.constant 0 : i32
    %c0_i32_0 = arith.constant 0 : i32
    return %arg0, %c0_i32 : i32, i32
  }
  func.func @transform_1(%arg0: i32) -> (i32, i32) {
    %c0_i32 = arith.constant 0 : i32
    %c0_i32_0 = arith.constant 0 : i32
    %c0_i32_1 = arith.constant 0 : i32
    return %c0_i32, %c0_i32_0 : i32, i32
  }
  func.func @transform_2(%arg0: i32) -> (i32, i32) {
    %c0_i32 = arith.constant 0 : i32
    %c0_i32_0 = arith.constant 0 : i32
    %c0_i32_1 = arith.constant 0 : i32
    return %c0_i32, %c0_i32_0 : i32, i32
  }
  func.func @transform_3(%arg0: i32) -> (i32, i32, i32, i32) {
    %c0_i32 = arith.constant 0 : i32
    %c0_i32_0 = arith.constant 0 : i32
    %c0_i32_1 = arith.constant 0 : i32
    %c0_i32_2 = arith.constant 0 : i32
    %c0_i32_3 = arith.constant 0 : i32
    return %c0_i32, %c0_i32_0, %c0_i32_1, %c0_i32_2 : i32, i32, i32, i32
  }
  func.func @transform_4(%arg0: i32) -> (i32, i32) {
    %c0_i32 = arith.constant 0 : i32
    %c0_i32_0 = arith.constant 0 : i32
    %c0_i32_1 = arith.constant 0 : i32
    return %c0_i32, %c0_i32_0 : i32, i32
  }
  func.func @transform_5(%arg0: i32) -> (i32, i32) {
    %c0_i32 = arith.constant 0 : i32
    %c0_i32_0 = arith.constant 0 : i32
    %c0_i32_1 = arith.constant 0 : i32
    return %c0_i32, %c0_i32_0 : i32, i32
  }
  func.func @transform_6(%arg0: i32) -> (i32, i32) {
    %c0_i32 = arith.constant 0 : i32
    %c0_i32_0 = arith.constant 0 : i32
    %c0_i32_1 = arith.constant 0 : i32
    return %c0_i32, %c0_i32_0 : i32, i32
  }
  func.func @transform_7(%arg0: i32) -> (i32, i32) {
    %c0_i32 = arith.constant 0 : i32
    %c0_i32_0 = arith.constant 0 : i32
    %c0_i32_1 = arith.constant 0 : i32
    return %c0_i32, %c0_i32_0 : i32, i32
  }
  func.func @transform_8(%arg0: i32) -> (i32, i32) {
    %c0_i32 = arith.constant 0 : i32
    %c0_i32_0 = arith.constant 0 : i32
    %c0_i32_1 = arith.constant 0 : i32
    return %c0_i32, %c0_i32_0 : i32, i32
  }
  func.func @transform_9(%arg0: i32) -> (i32, i32) {
    %c0_i32 = arith.constant 0 : i32
    %c0_i32_0 = arith.constant 0 : i32
    return %arg0, %c0_i32 : i32, i32
  }
}

</mosaic_0001>

<bundles_post_ra>
// kernel: tpu_custom_call.1
= control target key start
LH: loop header
LB: loop body
LE: loop exit
PB: predicated region body
PF: predicated region fallthrough
CT: control target
= control target key end

     0   :  { %s2004_s30 = smov 0   ;;  %s2572_s0 = inlined_call_operand.vmem [shape: bf16[128,16], index: 0, kind: input, shape index: {}]   ;;  %s2573_s1 = inlined_call_operand.vmem [shape: bf16[16,8], index: 1, kind: input, shape index: {}]   ;;  %s2574_s2 = inlined_call_operand.vmem [shape: f32[1,8], index: 2, kind: input, shape index: {}]   ;;  %s2575_s3 = inlined_call_operand.vmem [shape: bf16[3,3,8,8], index: 3, kind: input, shape index: {}]   ;;  %s2576_s4 = inlined_call_operand.vmem [shape: f32[1,8], index: 4, kind: input, shape index: {}]   ;;  %s2577_s5 = inlined_call_operand.vmem [shape: bf16[8,32], index: 5, kind: input, shape index: {}]   ;;  %s2578_s6 = inlined_call_operand.vmem [shape: f32[1,32], index: 6, kind: input, shape index: {}]   ;;  %s2579_s7 = inlined_call_operand.vmem [shape: bf16[16,32], index: 7, kind: input, shape index: {}]   ;;  %s2580_s8 = inlined_call_operand.vmem [shape: f32[1,32], index: 8, kind: input, shape index: {}]   ;;  %s2581_s9 = inlined_call_operand.vmem [shape: bf16[128,32], index: 9, kind: output, shape index: {}]  }
   0x1 LB: > { %s1676_s10 = sadd.s32 4294967295, %s1951_s30   ;;  %p1680_p0 = scmp.ge.s32.totalorder %s1951_s30, 1  ;;  %s1951_s30 = sphi %s2004_s30, %s19_s30  }
   0x2   : > { %p288_p1 = scmp.lt.s32.totalorder %s1951_s30, 3 }
   0x4   : > { %p289_p2 = pnand %p1680_p0, %p288_p1 }
   0x6   : > { %292 = sbr.rel (%p289_p2) target bundleno = 810 (0x32a), region = 56 }
   0xb   : > { %v1903_v0 = vld [vmem:[%s2573_s1] sm:$0xff]  ;;  %s1681_s13 = sshll.u32 %s1676_s10, 3  ;;  %vm377_vm0 = vcmask 130048   ;;  %vm435_vm1 = vcmask 60416   ;;  %v1953_v5 = vmov 0   ;;  %vm695_vm2 = vcmask 1043456  }
   0xc   : > { %p325_p3 = scmp.lt.s32.totalorder %s1681_s13, 15  ;;  %397 = vmatpush.bf16.msra.mxu0 %v1903_v0  ;;  %1929 = vmatpush.bf16.msra.mxu2 %v1903_v0  ;;  %438 = vst.msk [vmem:[#allocation2 + $0x8] sm:$0xf] %vm435_vm1, %v1953_v5  ;;  %v1711_v6 = vld [vmem:[%s2575_s3 + $0xc] sm:$0xf]  ;;  %vm543_vm4 = vcmask 57344  }
   0xd   : > { %1930 = vmatpush.bf16.msra.mxu3 %v1903_v0  ;;  %439 = vst.msk [vmem:[#allocation2 + $0xc] sm:$0xf] %vm435_vm1, %v1953_v5  ;;  %v1752_v7 = vld [vmem:[%s2575_s3 + $0x10] sm:$0xf]  ;;  %v697_v8 = vsel %vm695_vm2, %v1711_v6, 0  ;;  %vm670_vm8 = vcmask 64512  }
   0xe   : > { %s2601_s13 = smov (!%p325_p3, %s1681_s13), 15  ;;  %436 = vst.msk [vmem:[#allocation2] sm:$0xf] %vm435_vm1, %v1953_v5  ;;  %v743_v9 = vsel %vm695_vm2, %v1752_v7, 0  ;;  %v1761_v10 = vld [vmem:[%s2575_s3 + $0x14] sm:$0xf]  ;;  %1931 = vmatpush.bf16.msra.mxu1 %v697_v8 }
   0xf   : > { %s1682_s14 = sshll.u32 %s2601_s13, 2  ;;  %437 = vst.msk [vmem:[#allocation2 + $0x4] sm:$0xf] %vm435_vm1, %v1953_v5  ;;  %v797_v11 = vsel %vm695_vm2, %v1761_v10, 0  ;;  %v2074_v12 = vld [vmem:[%s2574_s2] ss:$0 sm:$0xff] }
  0x10   : > { %s328_s17 = scalar_lea.vmem %s2572_s0, %s1682_s14  ;;  %440 = vst.msk [vmem:[#allocation2 + $0x10] sm:$0xf] %vm435_vm1, %v1953_v5  ;;  %706 = vmatpush.bf16.msrb.mxu0 %v697_v8  ;;  %752 = vmatpush.bf16.msrb.mxu2 %v743_v9  ;;  %vm538_vm3 = vsmask.f32 7938  ;;  %vm544_vm5 = vsmask.f32 256  ;;  %s2551_s12 = scalar_lea.vmem %s2581_s9, %s1682_s14 }
  0x11   : > { %v2023_v1 = vld [vmem:[%s328_s17] sm:$0xff]  ;;  %v2025_v2 = vld [vmem:[%s328_s17 + $0x10] sm:$0xff]  ;;  %v2027_v3 = vld [vmem:[%s328_s17 + $0x18] sm:$0xff]  ;;  %441 = vst.msk [vmem:[#allocation2 + $0x14] sm:$0xf] %vm435_vm1, %v1953_v5  ;;  %806 = vmatpush.bf16.msrb.mxu3 %v797_v11  ;;  %vm1351_vm9 = vcmask 1046528  }
  0x12   : > { %1705 = vmatmul.msk.bf16.vlgmr.msra.gmra.mxu0 %vm377_vm0, %v2023_v1  ;;  %1707 = vmatmul.msk.bf16.vlgmr.msra.gmra.mxu2 %vm377_vm0, %v2025_v2  ;;  %v2035_v4 = vld [vmem:[%s328_s17 + $0x8] sm:$0xff]  ;;  %442 = vst.msk [vmem:[#allocation2 + $0x18] sm:$0xf] %vm435_vm1, %v1953_v5  ;;  %vm2079_vm6 = vmand %vm435_vm1, %vm538_vm3  ;;  %v1709_v45 = vld [vmem:[%s2575_s3 + $0x4] sm:$0xf]  ;;  %vm1408_vm10 = vcmask 1045504  }
  0x13   : > { %1708 = vmatmul.msk.bf16.vlgmr.msra.gmra.mxu3 %vm377_vm0, %v2027_v3  ;;  %443 = vst.msk [vmem:[#allocation2 + $0x1c] sm:$0xf] %vm435_vm1, %v1953_v5  ;;  %v540_v26 = vld [vmem:[#allocation2 + $0x8] sm:$0xf]  ;;  %vm2084_vm7 = vmand %vm543_vm4, %vm544_vm5  ;;  %v957_v54 = vsel %vm695_vm2, %v1709_v45, 0  ;;  %vm1611_vm11 = vcmask 257024  }
  0x14   : > { %444 = vst.msk [vmem:[#allocation2 + $0x20] sm:$0xf] %vm435_vm1, %v1953_v5  ;;  %v546_v28 = vld [vmem:[#allocation2 + $0xc] sm:$0x1]  ;;  %966 = vmatpush.bf16.msrb.mxu1 %v957_v54 }
  0x15   : > { %445 = vst.msk [vmem:[#allocation2 + $0x24] sm:$0xf] %vm435_vm1, %v1953_v5 }
  0x16   : > { %446 = vst.msk [vmem:[#allocation2 + $0x28] sm:$0xf] %vm435_vm1, %v1953_v5 }
  0x17   : > { %447 = vst.msk [vmem:[#allocation2 + $0x2c] sm:$0xf] %vm435_vm1, %v1953_v5  ;;  %v549_v51 = vld [vmem:[#allocation2 + $0x10] sm:$0xf] }
  0x18   : > { %448 = vst.msk [vmem:[#allocation2 + $0x30] sm:$0xf] %vm435_vm1, %v1953_v5  ;;  %v552_v52 = vld [vmem:[#allocation2 + $0x14] sm:$0x1] }
  0x19   : > { %449 = vst.msk [vmem:[#allocation2 + $0x34] sm:$0xf] %vm435_vm1, %v1953_v5 }
  0x1a   : > { %450 = vst.msk [vmem:[#allocation2 + $0x38] sm:$0xf] %vm435_vm1, %v1953_v5 }
  0x1b   : > { %451 = vst.msk [vmem:[#allocation2 + $0x3c] sm:$0xf] %vm435_vm1, %v1953_v5 }
  0x1c   : > { %452 = vst.msk [vmem:[#allocation2 + $0x40] sm:$0xf] %vm435_vm1, %v1953_v5 }
  0x1d   : > { %453 = vst.msk [vmem:[#allocation2 + $0x44] sm:$0xf] %vm435_vm1, %v1953_v5  ;;  %v567_v44 = vld [vmem:[#allocation2 + $0x28] sm:$0xf] }
  0x1e   : > { %454 = vst.msk [vmem:[#allocation2 + $0x48] sm:$0xf] %vm435_vm1, %v1953_v5  ;;  %v570_v50 = vld [vmem:[#allocation2 + $0x2c] sm:$0x1] }
  0x1f   : > { %455 = vst.msk [vmem:[#allocation2 + $0x4c] sm:$0xf] %vm435_vm1, %v1953_v5 }
  0x22   : > { %1706 = vmatmul.msk.bf16.gmra.mxu0 %vm377_vm0, %v2035_v4 }
  0x8f   : > { %v399_v13 = vpop.f32.mrf.mxu0 }
  0x90   : > { %v400_v14 = vadd.f32 %v2074_v12, %v399_v13  ;;  %v555_v13 = vld [vmem:[#allocation2 + $0x18] sm:$0xf] }
  0x92   : > { %v419_v15 = vmax.f32 %v400_v14, 0.0 }
  0x94   : > { %v427_v16 = vpack.c.bf16 %v419_v15, %v419_v15  ;;  %v573_v15 = vld [vmem:[#allocation2 + $0x30] sm:$0xf] }
  0x95   : > { %v409_v17 = vpop.f32.mrf.mxu2 }
  0x96   : > { %v457_v18 = vshrl.u32 %v427_v16, 16  ;;  %v410_v19 = vadd.f32 %v2074_v12, %v409_v17  ;;  %v460_v22 = vshll.u32 %v427_v16, 16  ;;  %v414_v16 = vpop.f32.mrf.mxu3  ;;  %v558_v17 = vld [vmem:[#allocation2 + $0x1c] sm:$0x1] }
  0x97   : > { %v401_v20 = vpop.f32.mrf.mxu0 }
  0x98   : > { %v459_v21 = vrot.slane %v457_v18, 7  ;;  %v402_v24 = vadd.f32 %v2074_v12, %v401_v20  ;;  %v423_v25 = vmax.f32 %v410_v19, 0.0  ;;  %v576_v20 = vld [vmem:[#allocation2 + $0x34] sm:$0x1] }
  0x9a   : > { %v462_v29 = vor.u32 %v460_v22, %v459_v21  ;;  %v463_v30 = vrot.slane %v459_v21, 4  ;;  %v420_v31 = vmax.f32 %v402_v24, 0.0  ;;  %v431_v32 = vpack.c.bf16 %v423_v25, %v423_v25 }
  0x9b   : > { %v415_v21 = vadd.f32 %v2074_v12, %v414_v16 }
  0x9c   : > { %v541_v33 = vsel %vm2079_vm6, %v462_v29, %v540_v26  ;;  %v547_v34 = vsel %vm2084_vm7, %v463_v30, %v546_v28  ;;  %v428_v35 = vpack.c.bf16 %v420_v31, %v420_v31  ;;  %v489_v36 = vshrl.u32 %v431_v32, 16 }
  0x9d   : > { %542 = vst [vmem:[#allocation2 + $0x8] sm:$0xf] %v541_v33  ;;  %v492_v37 = vshll.u32 %v431_v32, 16  ;;  %v411_v38 = vpop.f32.mrf.mxu2  ;;  %v425_v28 = vmax.f32 %v415_v21, 0.0 }
  0x9e   : > { %548 = vst [vmem:[#allocation2 + $0xc] sm:$0x1] %v547_v34  ;;  %v465_v39 = vshrl.u32 %v428_v35, 16  ;;  %v491_v40 = vrot.slane %v489_v36, 7  ;;  %v412_v41 = vadd.f32 %v2074_v12, %v411_v38  ;;  %v468_v42 = vshll.u32 %v428_v35, 16 }
  0x9f   : > { %v404_v43 = vpop.f32.mrf.mxu0  ;;  %v433_v33 = vpack.c.bf16 %v425_v28, %v425_v28 }
  0xa0   : > { %v467_v46 = vrot.slane %v465_v39, 7  ;;  %v405_v47 = vadd.f32 %v2074_v12, %v404_v43  ;;  %v494_v48 = vor.u32 %v492_v37, %v491_v40  ;;  %v495_v49 = vrot.slane %v491_v40, 4  ;;  %v607_v37 = vld [vmem:[%s2575_s3] sm:$0xf]  ;;  %v564_v43 = vld [vmem:[#allocation2 + $0x24] sm:$0x1] }
  0xa1   : > { %v424_v53 = vmax.f32 %v412_v41, 0.0  ;;  %v505_v35 = vshrl.u32 %v433_v33, 16  ;;  %v508_v36 = vshll.u32 %v433_v33, 16  ;;  %v913_v40 = vsel %vm695_vm2, %v607_v37, 0  ;;  %v416_v41 = vpop.f32.mrf.mxu3 }
  0xa2   : > { %v470_v55 = vor.u32 %v468_v42, %v467_v46  ;;  %v471_v56 = vrot.slane %v467_v46, 4  ;;  %v421_v57 = vmax.f32 %v405_v47, 0.0  ;;  %v568_v58 = vsel %vm2079_vm6, %v494_v48, %v567_v44  ;;  %v561_v42 = vld [vmem:[#allocation2 + $0x20] sm:$0xf]  ;;  %922 = vmatpush.bf16.msra.mxu0 %v913_v40  ;;  %v579_v48 = vld [vmem:[#allocation2 + $0x38] sm:$0xf] }
  0xa3   : > { %569 = vst [vmem:[#allocation2 + $0x28] sm:$0xf] %v568_v58  ;;  %v571_v59 = vsel %vm2084_vm7, %v495_v49, %v570_v50  ;;  %v432_v60 = vpack.c.bf16 %v424_v53, %v424_v53  ;;  %v507_v44 = vrot.slane %v505_v35, 7  ;;  %v417_v45 = vadd.f32 %v2074_v12, %v416_v41  ;;  %v582_v49 = vld [vmem:[#allocation2 + $0x3c] sm:$0x1] }
  0xa4   : > { %v550_v61 = vsel %vm2079_vm6, %v470_v55, %v549_v51  ;;  %v553_v62 = vsel %vm2084_vm7, %v471_v56, %v552_v52  ;;  %v429_v63 = vpack.c.bf16 %v421_v57, %v421_v57  ;;  %572 = vst [vmem:[#allocation2 + $0x2c] sm:$0x1] %v571_v59 }
  0xa5   : > { %551 = vst [vmem:[#allocation2 + $0x10] sm:$0xf] %v550_v61  ;;  %v1912_v0 = vld [vmem:[#allocation2 + $0x8] sm:$0xff]  ;;  %v497_v5 = vshrl.u32 %v432_v60, 16  ;;  %v500_v6 = vshll.u32 %v432_v60, 16  ;;  %v510_v50 = vor.u32 %v508_v36, %v507_v44  ;;  %v511_v51 = vrot.slane %v507_v44, 4 }
  0xa6   : > { %554 = vst [vmem:[#allocation2 + $0x14] sm:$0x1] %v553_v62  ;;  %v473_v7 = vshrl.u32 %v429_v63, 16  ;;  %1744 = vmatmul.msk.bf16.vlgmr.msrb.gmra.mxu0 %vm670_vm8, %v1912_v0  ;;  %1753 = vmatmul.msk.bf16.vlgmr.msrb.gmra.mxu2 %vm670_vm8, %v1912_v0  ;;  %v476_v11 = vshll.u32 %v429_v63, 16  ;;  %v426_v52 = vmax.f32 %v417_v45, 0.0  ;;  %v1905_v27 = vld [vmem:[#allocation2 + $0x8] sm:$0xff] }
  0xa7   : > { %v406_v8 = vpop.f32.mrf.mxu0  ;;  %v499_v9 = vrot.slane %v497_v5, 7  ;;  %1762 = vmatmul.msk.bf16.vlgmr.msrb.gmra.mxu3 %vm670_vm8, %v1912_v0  ;;  %v580_v56 = vsel %vm2079_vm6, %v510_v50, %v579_v48  ;;  %v585_v61 = vld [vmem:[#allocation2 + $0x40] sm:$0xf]  ;;  %v588_v62 = vld [vmem:[#allocation2 + $0x44] sm:$0x1] }
  0xa8   : > { %v475_v10 = vrot.slane %v473_v7, 7  ;;  %v407_v14 = vadd.f32 %v2074_v12, %v406_v8  ;;  %v583_v12 = vsel %vm2084_vm7, %v511_v51, %v582_v49  ;;  %v434_v57 = vpack.c.bf16 %v426_v52, %v426_v52  ;;  %581 = vst [vmem:[#allocation2 + $0x38] sm:$0xf] %v580_v56 }
  0xa9   : > { %v502_v18 = vor.u32 %v500_v6, %v499_v9  ;;  %v503_v19 = vrot.slane %v499_v9, 4  ;;  %584 = vst [vmem:[#allocation2 + $0x3c] sm:$0x1] %v583_v12 }
  0xaa   : > { %v478_v22 = vor.u32 %v476_v11, %v475_v10  ;;  %v479_v24 = vrot.slane %v475_v10, 4  ;;  %v422_v25 = vmax.f32 %v407_v14, 0.0  ;;  %v513_v58 = vshrl.u32 %v434_v57, 16  ;;  %v1904_v10 = vld [vmem:[#allocation2] sm:$0xff]  ;;  %v1710_v11 = vld [vmem:[%s2575_s3 + $0x8] sm:$0xf] }
  0xab   : > { %v574_v26 = vsel %vm2079_vm6, %v502_v18, %v573_v15  ;;  %v577_v32 = vsel %vm2084_vm7, %v503_v19, %v576_v20  ;;  %v516_v59 = vshll.u32 %v434_v57, 16  ;;  %v1916_v9 = vld [vmem:[#allocation2 + $0x28] sm:$0xff]  ;;  %v1009_v14 = vsel %vm695_vm2, %v1710_v11, 0  ;;  %v1826_v18 = vld [vmem:[%s2575_s3 + $0x18] sm:$0xf] }
  0xac   : > { %v556_v29 = vsel %vm2079_vm6, %v478_v22, %v555_v13  ;;  %v559_v30 = vsel %vm2084_vm7, %v479_v24, %v558_v17  ;;  %v430_v31 = vpack.c.bf16 %v422_v25, %v422_v25  ;;  %575 = vst [vmem:[#allocation2 + $0x30] sm:$0xf] %v574_v26  ;;  %v515_v60 = vrot.slane %v513_v58, 7  ;;  %v1867_v13 = vld [vmem:[%s2575_s3 + $0x1c] sm:$0xf]  ;;  %1018 = vmatpush.bf16.msra.mxu2 %v1009_v14  ;;  %v2180_v28 = vld [vmem:[#allocation2 + $0x28] sm:$0xff] }
  0xad   : > { %557 = vst [vmem:[#allocation2 + $0x18] sm:$0xf] %v556_v29  ;;  %v1913_v55 = vld [vmem:[#allocation2 + $0x10] sm:$0xff]  ;;  %v1190_v15 = vsel %vm695_vm2, %v1867_v13, 0  ;;  %v1876_v17 = vld [vmem:[%s2575_s3 + $0x20] sm:$0xf] }
  0xae   : > { %560 = vst [vmem:[#allocation2 + $0x1c] sm:$0x1] %v559_v30  ;;  %v481_v34 = vshrl.u32 %v430_v31, 16  ;;  %v484_v39 = vshll.u32 %v430_v31, 16  ;;  %v518_v63 = vor.u32 %v516_v59, %v515_v60  ;;  %v519_v0 = vrot.slane %v515_v60, 4  ;;  %1199 = vmatpush.bf16.msrb.mxu0 %v1190_v15  ;;  %v1906_v21 = vld [vmem:[#allocation2 + $0x10] sm:$0xff] }
  0xaf   : > { %578 = vst [vmem:[#allocation2 + $0x34] sm:$0x1] %v577_v32  ;;  %v1244_v19 = vsel %vm695_vm2, %v1876_v17, 0  ;;  %v1144_v20 = vsel %vm695_vm2, %v1826_v18, 0  ;;  %v2182_v29 = vld [vmem:[#allocation2 + $0x10] sm:$0xff] }
  0xb0   : > { %v483_v38 = vrot.slane %v481_v34, 7  ;;  %v586_v6 = vsel %vm2079_vm6, %v518_v63, %v585_v61  ;;  %v589_v7 = vsel %vm2084_vm7, %v519_v0, %v588_v62  ;;  %v1918_v16 = vld [vmem:[#allocation2 + $0x38] sm:$0xff]  ;;  %1153 = vmatpush.bf16.msra.mxu3 %v1144_v20 }
  0xb1   : > { %587 = vst [vmem:[#allocation2 + $0x40] sm:$0xf] %v586_v6 }
  0xb2   : > { %v486_v46 = vor.u32 %v484_v39, %v483_v38  ;;  %v487_v47 = vrot.slane %v483_v38, 4  ;;  %590 = vst [vmem:[#allocation2 + $0x44] sm:$0x1] %v589_v7 }
  0xb4   : > { %v562_v53 = vsel %vm2079_vm6, %v486_v46, %v561_v42  ;;  %v565_v54 = vsel %vm2084_vm7, %v487_v47, %v564_v43  ;;  %v2210_v42 = vld [vmem:[#allocation2 + $0x38] sm:$0xff] }
  0xb5   : > { %563 = vst [vmem:[#allocation2 + $0x20] sm:$0xf] %v562_v53  ;;  %v1914_v8 = vld [vmem:[#allocation2 + $0x18] sm:$0xff]  ;;  %v2232_v53 = vld [vmem:[#allocation2 + $0x28] sm:$0xff] }
  0xb6   : > { %566 = vst [vmem:[#allocation2 + $0x24] sm:$0x1] %v565_v54  ;;  %1745 = vmatmul.msk.bf16.gmra.mxu0 %vm670_vm8, %v1913_v55  ;;  %1754 = vmatmul.msk.bf16.gmra.mxu2 %vm670_vm8, %v1913_v55  ;;  %v1917_v23 = vld [vmem:[#allocation2 + $0x30] sm:$0xff]  ;;  %v1907_v24 = vld [vmem:[#allocation2 + $0x18] sm:$0xff] }
  0xb7   : > { %1763 = vmatmul.msk.bf16.gmra.mxu3 %vm670_vm8, %v1913_v55  ;;  %v2194_v34 = vld [vmem:[#allocation2 + $0x30] sm:$0xff]  ;;  %v2196_v35 = vld [vmem:[#allocation2 + $0x18] sm:$0xff] }
  0xb8   : > { %v2251_v61 = vld [vmem:[#allocation2 + $0x30] sm:$0xff] }
  0xb9   : > { %v1919_v22 = vld [vmem:[#allocation2 + $0x40] sm:$0xff] }
  0xbd   : > { %v1915_v5 = vld [vmem:[#allocation2 + $0x20] sm:$0xff] }
  0xbe   : > { %1747 = vmatmul.msk.bf16.vlgmr.msra.gmra.mxu1 %vm670_vm8, %v1915_v5  ;;  %v1908_v25 = vld [vmem:[#allocation2 + $0x20] sm:$0xff] }
  0xbf   : > { %1253 = vmatpush.bf16.msra.mxu1 %v1244_v19  ;;  %v2212_v43 = vld [vmem:[#allocation2 + $0x20] sm:$0xff] }
  0xc0   : > { %v2294_v19 = vld [vmem:[#allocation2 + $0x40] sm:$0xff] }
  0xc6   : > { %1746 = vmatmul.msk.bf16.gmra.mxu0 %vm670_vm8, %v1914_v8  ;;  %1755 = vmatmul.msk.bf16.gmra.mxu2 %vm670_vm8, %v1914_v8 }
  0xc7   : > { %1764 = vmatmul.msk.bf16.gmra.mxu3 %vm670_vm8, %v1914_v8 }
  0xce   : > { %1748 = vmatmul.msk.bf16.gmra.mxu1 %vm670_vm8, %v1916_v9 }
  0xd6   : > { %1756 = vmatmul.msk.bf16.gmra.mxu2 %vm670_vm8, %v1915_v5  ;;  %1802 = vmatmul.msk.bf16.vlgmr.msra.gmra.mxu0 %vm670_vm8, %v1904_v10 }
  0xd7   : > { %1765 = vmatmul.msk.bf16.gmra.mxu3 %vm670_vm8, %v1915_v5 }
  0xde   : > { %1749 = vmatmul.msk.bf16.gmra.mxu1 %vm670_vm8, %v1917_v23 }
  0xe6   : > { %1757 = vmatmul.msk.bf16.gmra.mxu2 %vm670_vm8, %v1916_v9  ;;  %1803 = vmatmul.msk.bf16.gmra.mxu0 %vm670_vm8, %v1905_v27 }
  0xe7   : > { %1766 = vmatmul.msk.bf16.gmra.mxu3 %vm670_vm8, %v1916_v9 }
  0xee   : > { %1750 = vmatmul.msk.bf16.gmra.mxu1 %vm670_vm8, %v1918_v16 }
  0xf6   : > { %1758 = vmatmul.msk.bf16.gmra.mxu2 %vm670_vm8, %v1917_v23  ;;  %1804 = vmatmul.msk.bf16.gmra.mxu0 %vm670_vm8, %v1906_v21 }
  0xf7   : > { %1767 = vmatmul.msk.bf16.gmra.mxu3 %vm670_vm8, %v1917_v23  ;;  %v2272_v23 = vld [vmem:[#allocation2 + $0x38] sm:$0xff] }
  0xfe   : > { %1751 = vmatmul.msk.bf16.gmra.mxu1 %vm670_vm8, %v1919_v22 }
 0x106   : > { %1759 = vmatmul.msk.bf16.gmra.mxu2 %vm670_vm8, %v1918_v16  ;;  %1805 = vmatmul.msk.bf16.gmra.mxu0 %vm670_vm8, %v1907_v24 }
 0x107   : > { %1768 = vmatmul.msk.bf16.gmra.mxu3 %vm670_vm8, %v1918_v16 }
 0x10e   : > { %1810 = vmatmul.msk.bf16.vlgmr.msrb.gmra.mxu1 %vm670_vm8, %v1904_v10 }
 0x116   : > { %1760 = vmatmul.msk.bf16.gmra.mxu2 %vm670_vm8, %v1919_v22  ;;  %1806 = vmatmul.msk.bf16.gmra.mxu0 %vm670_vm8, %v1908_v25 }
 0x117   : > { %1769 = vmatmul.msk.bf16.gmra.mxu3 %vm670_vm8, %v1919_v22 }
 0x11e   : > { %1811 = vmatmul.msk.bf16.gmra.mxu1 %vm670_vm8, %v1905_v27 }
 0x123   : > { %v708_v26 = vpop.f32.mrf.mxu0 }
 0x126   : > { %1807 = vmatmul.msk.bf16.gmra.mxu0 %vm670_vm8, %v2180_v28  ;;  %1818 = vmatmul.msk.bf16.vlgmr.msra.gmra.mxu2 %vm670_vm8, %v1904_v10 }
 0x127   : > { %1859 = vmatmul.msk.bf16.vlgmr.msra.gmra.mxu3 %vm670_vm8, %v2182_v29 }
 0x129   : > { %v2219_v44 = vpop.f32.mrf.mxu2 }
 0x12a   : > { %v2189_v30 = vpop.f32.mrf.mxu3 }
 0x12b   : > { %v710_v31 = vpop.f32.mrf.mxu0 }
 0x12c   : > { %v2312_v31 = vld [vmem:[#allocation2 + $0x48] sm:$0xff] }
 0x12e   : > { %1812 = vmatmul.msk.bf16.gmra.mxu1 %vm670_vm8, %v1906_v21 }
 0x131   : > { %v2226_v48 = vpop.f32.mrf.mxu2 }
 0x132   : > { %v2192_v32 = vpop.f32.mrf.mxu3 }
 0x133   : > { %v712_v33 = vpop.f32.mrf.mxu0 }
 0x136   : > { %1808 = vmatmul.msk.bf16.gmra.mxu0 %vm670_vm8, %v2194_v34  ;;  %1819 = vmatmul.msk.bf16.gmra.mxu2 %vm670_vm8, %v1905_v27 }
 0x137   : > { %1860 = vmatmul.msk.bf16.gmra.mxu3 %vm670_vm8, %v2196_v35 }
 0x139   : > { %v2243_v12 = vpop.f32.mrf.mxu2 }
 0x13a   : > { %v2203_v36 = vpop.f32.mrf.mxu3 }
 0x13b   : > { %v714_v37 = vpop.f32.mrf.mxu0  ;;  %v2205_v38 = vpop.f32.mrf.mxu1 }
 0x13e   : > { %1813 = vmatmul.msk.bf16.gmra.mxu1 %vm670_vm8, %v1907_v24 }
 0x141   : > { %v2253_v62 = vpop.f32.mrf.mxu2 }
 0x142   : > { %v2208_v39 = vpop.f32.mrf.mxu3 }
 0x143   : > { %v716_v40 = vpop.f32.mrf.mxu0  ;;  %v722_v41 = vpop.f32.mrf.mxu1 }
 0x146   : > { %1809 = vmatmul.msk.bf16.gmra.mxu0 %vm670_vm8, %v2210_v42  ;;  %1820 = vmatmul.msk.bf16.gmra.mxu2 %vm670_vm8, %v1906_v21 }
 0x147   : > { %1861 = vmatmul.msk.bf16.gmra.mxu3 %vm670_vm8, %v2212_v43 }
 0x149   : > { %v2266_v6 = vpop.f32.mrf.mxu2 }
 0x14a   : > { %v2221_v45 = vpop.f32.mrf.mxu3 }
 0x14b   : > { %v718_v46 = vpop.f32.mrf.mxu0  ;;  %v2223_v47 = vpop.f32.mrf.mxu1 }
 0x14e   : > { %1814 = vmatmul.msk.bf16.gmra.mxu1 %vm670_vm8, %v1908_v25 }
 0x151   : > { %v2280_v27 = vpop.f32.mrf.mxu2 }
 0x152   : > { %v2228_v49 = vpop.f32.mrf.mxu3 }
 0x153   : > { %v726_v50 = vpop.f32.mrf.mxu1  ;;  %v924_v51 = vpop.f32.mrf.mxu0 }
 0x154   : > { %v2230_v52 = vadd.f32 %v924_v51, %v708_v26 }
 0x156   : > { %1821 = vmatmul.msk.bf16.gmra.mxu2 %vm670_vm8, %v1907_v24  ;;  %1868 = vmatmul.msk.bf16.vlgmr.msrb.gmra.mxu0 %vm670_vm8, %v2182_v29 }
 0x157   : > { %1862 = vmatmul.msk.bf16.gmra.mxu3 %vm670_vm8, %v2232_v53 }
 0x159   : > { %v2292_v18 = vpop.f32.mrf.mxu2 }
 0x15a   : > { %v2239_v54 = vpop.f32.mrf.mxu3 }
 0x15b   : > { %v2241_v55 = vpop.f32.mrf.mxu1  ;;  %v926_v56 = vpop.f32.mrf.mxu0 }
 0x15e   : > { %1815 = vmatmul.msk.bf16.gmra.mxu1 %vm670_vm8, %v2180_v28 }
 0x161   : > { %v2304_v24 = vpop.f32.mrf.mxu2 }
 0x162   : > { %v2247_v57 = vpop.f32.mrf.mxu3 }
 0x163   : > { %v730_v58 = vpop.f32.mrf.mxu1  ;;  %v928_v59 = vpop.f32.mrf.mxu0 }
 0x164   : > { %v2249_v60 = vadd.f32 %v928_v59, %v712_v33 }
 0x166   : > { %1822 = vmatmul.msk.bf16.gmra.mxu2 %vm670_vm8, %v1908_v25  ;;  %1869 = vmatmul.msk.bf16.gmra.mxu0 %vm670_vm8, %v2196_v35 }
 0x167   : > { %1863 = vmatmul.msk.bf16.gmra.mxu3 %vm670_vm8, %v2251_v61 }
 0x169   : > { %v2320_v33 = vpop.f32.mrf.mxu2 }
 0x16a   : > { %v2260_v63 = vpop.f32.mrf.mxu3 }
 0x16b   : > { %2586 = vst [vmem:[#allocation3_spill] sm:$0xff] %v2260_v63  ;;  %v2262_v0 = vpop.f32.mrf.mxu1  ;;  %v930_v5 = vpop.f32.mrf.mxu0 }
 0x16e   : > { %1816 = vmatmul.msk.bf16.gmra.mxu1 %vm670_vm8, %v2194_v34 }
 0x172   : > { %v2268_v7 = vpop.f32.mrf.mxu3 }
 0x173   : > { %v734_v8 = vpop.f32.mrf.mxu1  ;;  %v932_v9 = vpop.f32.mrf.mxu0 }
 0x174   : > { %v2270_v10 = vadd.f32 %v932_v9, %v716_v40  ;;  %v2328_v40 = vpop.f32.mrf.mxu2 }
 0x176   : > { %1823 = vmatmul.msk.bf16.gmra.mxu2 %vm670_vm8, %v2180_v28  ;;  %1870 = vmatmul.msk.bf16.gmra.mxu0 %vm670_vm8, %v2212_v43 }
 0x177   : > { %1864 = vmatmul.msk.bf16.gmra.mxu3 %vm670_vm8, %v2272_v23 }
 0x17a   : > { %v2282_v11 = vpop.f32.mrf.mxu3 }
 0x17b   : > { %2587 = vst [vmem:[#allocation4_spill] sm:$0xff] %v2282_v11  ;;  %v2284_v13 = vpop.f32.mrf.mxu1  ;;  %v934_v14 = vpop.f32.mrf.mxu0 }
 0x17c   : > { %v2339_v59 = vpop.f32.mrf.mxu2 }
 0x17e   : > { %1817 = vmatmul.msk.bf16.gmra.mxu1 %vm670_vm8, %v2210_v42 }
 0x182   : > { %v2288_v15 = vpop.f32.mrf.mxu3 }
 0x183   : > { %2588 = vst [vmem:[#allocation5_spill] sm:$0xff] %v2288_v15  ;;  %v738_v16 = vpop.f32.mrf.mxu1  ;;  %v2290_v17 = vpop.f32.mrf.mxu0 }
 0x184   : > { %v2347_v9 = vpop.f32.mrf.mxu2 }
 0x186   : > { %1824 = vmatmul.msk.bf16.gmra.mxu2 %vm670_vm8, %v2194_v34  ;;  %1871 = vmatmul.msk.bf16.gmra.mxu0 %vm670_vm8, %v2232_v53 }
 0x187   : > { %1865 = vmatmul.msk.bf16.gmra.mxu3 %vm670_vm8, %v2294_v19 }
 0x18a   : > { %v2302_v20 = vpop.f32.mrf.mxu3 }
 0x18b   : > { %2589 = vst [vmem:[#allocation6_spill] sm:$0xff] %v2302_v20  ;;  %v938_v21 = vpop.f32.mrf.mxu0  ;;  %v968_v22 = vpop.f32.mrf.mxu1 }
 0x18e   : > { %1877 = vmatmul.msk.bf16.vlgmr.msra.gmra.mxu1 %vm670_vm8, %v2182_v29 }
 0x192   : > { %v2308_v25 = vpop.f32.mrf.mxu3 }
 0x193   : > { %2590 = vst [vmem:[#allocation7_spill] sm:$0xff] %v2308_v25  ;;  %v2310_v26 = vpop.f32.mrf.mxu0  ;;  %v970_v28 = vpop.f32.mrf.mxu1 }
 0x196   : > { %1825 = vmatmul.msk.bf16.gmra.mxu2 %vm670_vm8, %v2210_v42  ;;  %1872 = vmatmul.msk.bf16.gmra.mxu0 %vm670_vm8, %v2251_v61 }
 0x197   : > { %1866 = vmatmul.msk.bf16.gmra.mxu3 %vm670_vm8, %v2312_v31 }
 0x19a   : > { %v2322_v34 = vpop.f32.mrf.mxu3 }
 0x19b   : > { %2591 = vst [vmem:[#allocation8_spill] sm:$0xff] %v2322_v34  ;;  %v942_v29 = vpop.f32.mrf.mxu0  ;;  %v2324_v37 = vpop.f32.mrf.mxu1 }
 0x19e   : > { %1878 = vmatmul.msk.bf16.gmra.mxu1 %vm670_vm8, %v2196_v35 }
 0x1a2   : > { %v2330_v41 = vpop.f32.mrf.mxu3 }
 0x1a3   : > { %2592 = vst [vmem:[#allocation9_spill] sm:$0xff] %v2330_v41  ;;  %v2332_v42 = vpop.f32.mrf.mxu0  ;;  %v975_v46 = vpop.f32.mrf.mxu1 }
 0x1a6   : > { %1873 = vmatmul.msk.bf16.gmra.mxu0 %vm670_vm8, %v2272_v23 }
 0x1aa   : > { %v1155_v50 = vpop.f32.mrf.mxu3 }
 0x1ab   : > { %v1295_v51 = vadd.f32 %v1155_v50, %v2230_v52  ;;  %v946_v56 = vpop.f32.mrf.mxu0  ;;  %v2337_v58 = vpop.f32.mrf.mxu1 }
 0x1ae   : > { %1879 = vmatmul.msk.bf16.gmra.mxu1 %vm670_vm8, %v2212_v43  ;;  %v2356_v43 = vpop.f32.mrf.mxu2 }
 0x1b2   : > { %v1157_v35 = vpop.f32.mrf.mxu3 }
 0x1b3   : > { %v2343_v5 = vpop.f32.mrf.mxu0  ;;  %v2345_v8 = vpop.f32.mrf.mxu1  ;;  %v1928_v35 = vld [vmem:[%s2579_s7] sm:$0xff] }
 0x1b4   : > { %1565 = vmatpush.bf16.msrb.mxu3 %v1928_v35 }
 0x1b6   : > { %1874 = vmatmul.msk.bf16.gmra.mxu0 %vm670_vm8, %v2294_v19 }
 0x1b7   : > { %1893 = vmatmul.msk.bf16.vlgmr.msrb.gmra.mxu3 %vm377_vm0, %v2023_v1 }
 0x1ba   : > { %v1159_v14 = vpop.f32.mrf.mxu3 }
 0x1bb   : > { %v1296_v52 = vadd.f32 %v1159_v14, %v2249_v60  ;;  %v950_v16 = vpop.f32.mrf.mxu0  ;;  %v2352_v21 = vpop.f32.mrf.mxu1  ;;  %v1477_v60 = vld [vmem:[%s2577_s5] sm:$0xf] }
 0x1bc   : > { %v2371_v14 = vpop.f32.mrf.mxu2 }
 0x1be   : > { %1880 = vmatmul.msk.bf16.gmra.mxu1 %vm670_vm8, %v2232_v53  ;;  %v1515_v53 = vsel %vm695_vm2, %v1477_v60, 0 }
 0x1bf   : > { %1524 = vmatpush.bf16.msrb.mxu2 %v1515_v53  ;;  %v969_v53 = vadd.f32 %v968_v22, %v2219_v44 }
 0x1c2   : > { %v1161_v29 = vpop.f32.mrf.mxu3 }
 0x1c3   : > { %v2358_v50 = vpop.f32.mrf.mxu0  ;;  %v2360_v56 = vpop.f32.mrf.mxu1 }
 0x1c4   : > { %v2384_v35 = vpop.f32.mrf.mxu2 }
 0x1c6   : > { %1875 = vmatmul.msk.bf16.gmra.mxu0 %vm670_vm8, %v2312_v31 }
 0x1c7   : > { %1894 = vmatmul.msk.bf16.gmra.mxu3 %vm377_vm0, %v2035_v4  ;;  %v974_v4 = vadd.f32 %v2324_v37, %v2243_v12 }
 0x1ca   : > { %v1163_v16 = vpop.f32.mrf.mxu3 }
 0x1cb   : > { %v2374_v29 = vadd.f32 %v1163_v16, %v2270_v10  ;;  %v954_v41 = vpop.f32.mrf.mxu0  ;;  %v2376_v34 = vpop.f32.mrf.mxu1  ;;  %v937_v10 = vadd.f32 %v2290_v17, %v2205_v38 }
 0x1cc   : > { %v971_v41 = vadd.f32 %v970_v28, %v2226_v48  ;;  %v2396_v63 = vpop.f32.mrf.mxu2 }
 0x1ce   : > { %1881 = vmatmul.msk.bf16.gmra.mxu1 %vm670_vm8, %v2251_v61 }
 0x1d2   : > { %v1165_v20 = vpop.f32.mrf.mxu3 }
 0x1d3   : > { %v2382_v25 = vpop.f32.mrf.mxu1  ;;  %v1201_v60 = vpop.f32.mrf.mxu0 }
 0x1d4   : > { %v1303_v16 = vadd.f32 %v1201_v60, %v969_v53  ;;  %v1020_v60 = vpop.f32.mrf.mxu2  ;;  %v941_v53 = vadd.f32 %v2310_v26, %v2223_v47 }
 0x1d6   : > { %v1352_v44 = vrot.slane %v1303_v16, 1 }
 0x1d7   : > { %1895 = vmatmul.msk.bf16.gmra.mxu3 %vm377_vm0, %v2025_v2  ;;  %v945_v2 = vadd.f32 %v2332_v42, %v2241_v55 }
 0x1da   : > { %v1167_v15 = vpop.f32.mrf.mxu3 }
 0x1db   : > { %v2390_v11 = vadd.f32 %v1167_v15, %v937_v10  ;;  %v2392_v1 = vpop.f32.mrf.mxu1  ;;  %v1203_v61 = vpop.f32.mrf.mxu0  ;;  %v976_v10 = vadd.f32 %v975_v46, %v2253_v62 }
 0x1dc   : > { %v1304_v20 = vadd.f32 %v1203_v61, %v971_v41  ;;  %v1022_v62 = vpop.f32.mrf.mxu2 }
 0x1de   : > { %v1353_v22 = vrot.slane %v1304_v20, 1  ;;  %1882 = vmatmul.msk.bf16.gmra.mxu1 %vm670_vm8, %v2272_v23 }
 0x1e0   : > { %v1354_v38 = vsel %vm1351_vm9, %v1352_v44, %v1353_v22 }
 0x1e1   : > { %v2401_v48 = vadd.f32 %v1354_v38, %v1295_v51  ;;  %v979_v38 = vadd.f32 %v2337_v58, %v2266_v6 }
 0x1e2   : > { %v1169_v15 = vpop.f32.mrf.mxu3 }
 0x1e3   : > { %v2403_v17 = vpop.f32.mrf.mxu1  ;;  %v1206_v28 = vpop.f32.mrf.mxu0  ;;  %v981_v15 = vadd.f32 %v2345_v8, %v2280_v27 }
 0x1e4   : > { %v1305_v41 = vadd.f32 %v1206_v28, %v974_v4 }
 0x1e6   : > { %v1355_v44 = vrot.slane %v1305_v41, 1 }
 0x1e7   : > { %1896 = vmatmul.msk.bf16.gmra.mxu3 %vm377_vm0, %v2027_v3  ;;  %v984_v3 = vadd.f32 %v2352_v21, %v2292_v18 }
 0x1ea   : > { %v1171_v16 = vpop.f32.mrf.mxu3 }
 0x1eb   : > { %v2410_v23 = vadd.f32 %v1171_v16, %v941_v53  ;;  %v2412_v61 = vpop.f32.mrf.mxu1  ;;  %v1208_v51 = vpop.f32.mrf.mxu0 }
 0x1ec   : > { %v1306_v20 = vadd.f32 %v1208_v51, %v976_v10  ;;  %v1025_v10 = vpop.f32.mrf.mxu2 }
 0x1ee   : > { %v1356_v22 = vrot.slane %v1306_v20, 1  ;;  %1883 = vmatmul.msk.bf16.gmra.mxu1 %vm670_vm8, %v2294_v19  ;;  %v949_v20 = vadd.f32 %v2343_v5, %v2262_v0 }
 0x1f0   : > { %v1357_v47 = vsel %vm1351_vm9, %v1355_v44, %v1356_v22  ;;  %v986_v44 = vadd.f32 %v2360_v56, %v2304_v24  ;;  %v1023_v24 = vadd.f32 %v1022_v62, %v2192_v32  ;;  %v1021_v56 = vadd.f32 %v1020_v60, %v2189_v30 }
 0x1f1   : > { %v2419_v12 = vadd.f32 %v1357_v47, %v1296_v52 }
 0x1f2   : > { %v1173_v26 = vpop.f32.mrf.mxu3 }
 0x1f3   : > { %v2421_v37 = vpop.f32.mrf.mxu1  ;;  %v1211_v46 = vpop.f32.mrf.mxu0 }
 0x1f4   : > { %v1307_v28 = vadd.f32 %v1211_v46, %v979_v38  ;;  %v1027_v51 = vpop.f32.mrf.mxu2 }
 0x1f6   : > { %v1358_v16 = vrot.slane %v1307_v28, 1 }
 0x1fa   : > { %v1175_v19 = vpop.f32.mrf.mxu3 }
 0x1fb   : > { %v2429_v4 = vadd.f32 %v1175_v19, %v945_v2  ;;  %v2431_v52 = vpop.f32.mrf.mxu1  ;;  %v1213_v53 = vpop.f32.mrf.mxu0 }
 0x1fc   : > { %v1308_v41 = vadd.f32 %v1213_v53, %v981_v15  ;;  %v2451_v15 = vpop.f32.mrf.mxu2  ;;  %v989_v53 = vadd.f32 %v2376_v34, %v2320_v33 }
 0x1fe   : > { %v1359_v6 = vrot.slane %v1308_v41, 1  ;;  %1884 = vmatmul.msk.bf16.gmra.mxu1 %vm670_vm8, %v2312_v31 }
 0x200   : > { %v1360_v55 = vsel %vm1351_vm9, %v1358_v16, %v1359_v6  ;;  %v953_v16 = vadd.f32 %v2358_v50, %v2284_v13  ;;  %v1026_v13 = vadd.f32 %v1025_v10, %v2203_v36 }
 0x201   : > { %v2439_v27 = vadd.f32 %v1360_v55, %v2374_v29 }
 0x202   : > { %v1177_v42 = vpop.f32.mrf.mxu3 }
 0x203   : > { %v2441_v58 = vpop.f32.mrf.mxu1  ;;  %v1216_v8 = vpop.f32.mrf.mxu0 }
 0x204   : > { %v1309_v31 = vadd.f32 %v1216_v8, %v984_v3  ;;  %v1032_v6 = vpop.f32.mrf.mxu2 }
 0x206   : > { %v1361_v38 = vrot.slane %v1309_v31, 1  ;;  %v1028_v31 = vadd.f32 %v1027_v51, %v2208_v39  ;;  %v996_v39 = vadd.f32 %v2403_v17, %v2347_v9 }
 0x20a   : > { %v1179_v22 = vpop.f32.mrf.mxu3 }
 0x20b   : > { %v2449_v47 = vadd.f32 %v1179_v22, %v949_v20  ;;  %v1218_v29 = vpop.f32.mrf.mxu0  ;;  %v1255_v26 = vpop.f32.mrf.mxu1 }
 0x20c   : > { %v1310_v46 = vadd.f32 %v1218_v29, %v986_v44  ;;  %v1319_v41 = vadd.f32 %v1255_v26, %v1021_v56 }
 0x20e   : > { %v1362_v2 = vrot.slane %v1310_v46, 1  ;;  %v1409_v60 = vrot.slane %v1319_v41, 2 }
 0x210   : > { %v1363_v28 = vsel %vm1351_vm9, %v1361_v38, %v1362_v2  ;;  %v1035_v38 = vpop.f32.mrf.mxu2 }
 0x211   : > { %v2455_v18 = vadd.f32 %v1363_v28, %v2390_v11  ;;  %v991_v11 = vadd.f32 %v2382_v25, %v2328_v40  ;;  %v2474_v40 = vld [vmem:[%s2576_s4] ss:$0 sm:$0xff]  ;;  %v994_v28 = vadd.f32 %v2392_v1, %v2339_v59 }
 0x212   : > { %v1181_v0 = vpop.f32.mrf.mxu3 }
 0x213   : > { %v1221_v5 = vpop.f32.mrf.mxu0  ;;  %v1257_v21 = vpop.f32.mrf.mxu1 }
 0x214   : > { %v1320_v19 = vadd.f32 %v1257_v21, %v1023_v24  ;;  %v1311_v55 = vadd.f32 %v1221_v5, %v989_v53 }
 0x216   : > { %v1410_v42 = vrot.slane %v1320_v19, 2  ;;  %v1364_v20 = vrot.slane %v1311_v55, 1 }
 0x218   : > { %v1411_v33 = vsel %vm1408_vm10, %v1409_v60, %v1410_v42  ;;  %v1031_v60 = vadd.f32 %v2451_v15, %v2221_v45  ;;  %v1036_v45 = vadd.f32 %v1035_v38, %v2239_v54  ;;  %v1004_v54 = vadd.f32 %v2431_v52, %v2384_v35 }
 0x219   : > { %v1441_v25 = vadd.f32 %v1411_v33, %v2401_v48  ;;  %v999_v33 = vadd.f32 %v2412_v61, %v2356_v43 }
 0x21a   : > { %v1183_v8 = vpop.f32.mrf.mxu3 }
 0x21b   : > { %v2465_v3 = vadd.f32 %v1183_v8, %v953_v16  ;;  %v1223_v32 = vpop.f32.mrf.mxu0  ;;  %v1260_v30 = vpop.f32.mrf.mxu1  ;;  %v1453_v10 = vadd.f32 %v2474_v40, %v1441_v25 }
 0x21c   : > { %v1312_v62 = vadd.f32 %v1223_v32, %v991_v11  ;;  %v1321_v22 = vadd.f32 %v1260_v30, %v1026_v13  ;;  %v1037_v16 = vpop.f32.mrf.mxu2  ;;  %v1033_v30 = vadd.f32 %v1032_v6, %v2228_v49 }
 0x21d   : > { %v1461_v5 = vmax.f32 %v1453_v10, 0.0 }
 0x21e   : > { %v1365_v34 = vrot.slane %v1312_v62, 1  ;;  %v1412_v2 = vrot.slane %v1321_v22, 2 }
 0x21f   : > { %v1469_v53 = vpack.c.bf16 %v1461_v5, %v1461_v5 }
 0x220   : > { %v1366_v50 = vsel %vm1351_vm9, %v1364_v20, %v1365_v34 }
 0x221   : > { %v2477_v44 = vadd.f32 %v1366_v50, %v2410_v23  ;;  %v1490_v42 = vunpack.c.l.b16 %v1469_v53 }
 0x222   : > { %v1185_v29 = vpop.f32.mrf.mxu3 }
 0x223   : > { %v1226_v26 = vpop.f32.mrf.mxu0  ;;  %v1262_v46 = vpop.f32.mrf.mxu1 }
 0x224   : > { %v1322_v36 = vadd.f32 %v1262_v46, %v1028_v31  ;;  %v1313_v51 = vadd.f32 %v1226_v26, %v994_v28  ;;  %v1040_v20 = vpop.f32.mrf.mxu2 }
 0x226   : > { %v1413_v48 = vrot.slane %v1322_v36, 2  ;;  %v1367_v11 = vrot.slane %v1313_v51, 1 }
 0x228   : > { %v1414_v0 = vsel %vm1408_vm10, %v1412_v2, %v1413_v48 }
 0x229   : > { %v1442_v23 = vadd.f32 %v1414_v0, %v2419_v12 }
 0x22b   : > { %v1454_v21 = vadd.f32 %v2474_v40, %v1442_v23  ;;  %v1228_v24 = vpop.f32.mrf.mxu0  ;;  %v1265_v56 = vpop.f32.mrf.mxu1 }
 0x22c   : > { %v1314_v19 = vadd.f32 %v1228_v24, %v996_v39  ;;  %v1323_v34 = vadd.f32 %v1265_v56, %v1031_v60 }
 0x22d   : > { %v1462_v41 = vmax.f32 %v1454_v21, 0.0 }
 0x22e   : > { %v1368_v55 = vrot.slane %v1314_v19, 1  ;;  %v1415_v22 = vrot.slane %v1323_v34, 2 }
 0x22f   : > { %v1470_v59 = vpack.c.bf16 %v1462_v41, %v1462_v41 }
 0x230   : > { %v1369_v1 = vsel %vm1351_vm9, %v1367_v11, %v1368_v55 }
 0x231   : > { %v1491_v8 = vunpack.c.l.b16 %v1470_v59  ;;  %v2490_v12 = vadd.f32 %v1369_v1, %v2429_v4  ;;  %v1001_v4 = vadd.f32 %v2421_v37, %v2371_v14  ;;  %v1038_v14 = vadd.f32 %v1037_v16, %v2247_v57  ;;  %v1042_v37 = vpop.f32.mrf.mxu2  ;;  %v2593_v59 = vld [vmem:[#allocation3_spill] sm:$0xff] }
 0x232   : > { %v1006_v57 = vadd.f32 %v2441_v58, %v2396_v63  ;;  %v1043_v58 = vadd.f32 %v1042_v37, %v2268_v7  ;;  %v1041_v1 = vadd.f32 %v1040_v20, %v2593_v59 }
 0x233   : > { %v1498_v9 = vpack.c.b16 %v1491_v8, %v1490_v42  ;;  %v1231_v17 = vpop.f32.mrf.mxu0  ;;  %v1267_v32 = vpop.f32.mrf.mxu1 }
 0x234   : > { %v1324_v62 = vadd.f32 %v1267_v32, %v1033_v30  ;;  %v1315_v13 = vadd.f32 %v1231_v17, %v999_v33 }
 0x235   : > { %1885 = vmatmul.msk.bf16.vlgmr.msrb.gmra.mxu2 %vm670_vm8, %v1498_v9 }
 0x236   : > { %v1416_v50 = vrot.slane %v1324_v62, 2  ;;  %v1370_v6 = vrot.slane %v1315_v13, 1  ;;  %v2594_v62 = vld [vmem:[#allocation4_spill] sm:$0xff] }
 0x238   : > { %v1417_v29 = vsel %vm1408_vm10, %v1415_v22, %v1416_v50 }
 0x239   : > { %v1443_v43 = vadd.f32 %v1417_v29, %v2439_v27  ;;  %v1045_v24 = vpop.f32.mrf.mxu2 }
 0x23b   : > { %v1233_v25 = vpop.f32.mrf.mxu0  ;;  %v1270_v31 = vpop.f32.mrf.mxu1  ;;  %v1455_v48 = vadd.f32 %v2474_v40, %v1443_v43 }
 0x23c   : > { %v1316_v49 = vadd.f32 %v1233_v25, %v1001_v4  ;;  %v1325_v46 = vadd.f32 %v1270_v31, %v1036_v45  ;;  %v2595_v4 = vld [vmem:[#allocation5_spill] sm:$0xff] }
 0x23d   : > { %v1463_v27 = vmax.f32 %v1455_v48, 0.0 }
 0x23e   : > { %v1371_v26 = vrot.slane %v1316_v49, 1  ;;  %v1418_v28 = vrot.slane %v1325_v46, 2 }
 0x23f   : > { %v1471_v56 = vpack.c.bf16 %v1463_v27, %v1463_v27 }
 0x240   : > { %v1372_v15 = vsel %vm1351_vm9, %v1370_v6, %v1371_v26 }
 0x241   : > { %v2505_v61 = vadd.f32 %v1372_v15, %v2449_v47  ;;  %v1047_v8 = vpop.f32.mrf.mxu2 }
 0x242   : > { %v1048_v13 = vadd.f32 %v1047_v8, %v2595_v4 }
 0x243   : > { %v1236_v36 = vpop.f32.mrf.mxu0  ;;  %v1272_v10 = vpop.f32.mrf.mxu1 }
 0x244   : > { %v1326_v2 = vadd.f32 %v1272_v10, %v1038_v14  ;;  %v1317_v5 = vadd.f32 %v1236_v36, %v1004_v54 }
 0x246   : > { %v1419_v0 = vrot.slane %v1326_v2, 2  ;;  %v1373_v53 = vrot.slane %v1317_v5, 1  ;;  %v2596_v2 = vld [vmem:[#allocation7_spill] sm:$0xff] }
 0x248   : > { %v1420_v38 = vsel %vm1408_vm10, %v1418_v28, %v1419_v0  ;;  %v2597_v0 = vld [vmem:[#allocation6_spill] sm:$0xff] }
 0x249   : > { %v1444_v47 = vadd.f32 %v1420_v38, %v2455_v18  ;;  %v1492_v18 = vunpack.c.l.b16 %v1471_v56  ;;  %v1050_v33 = vpop.f32.mrf.mxu2 }
 0x24a   : > { %v1051_v54 = vadd.f32 %v1050_v33, %v2597_v0 }
 0x24b   : > { %v1456_v23 = vadd.f32 %v2474_v40, %v1444_v47  ;;  %v1238_v39 = vpop.f32.mrf.mxu0  ;;  %v1275_v51 = vpop.f32.mrf.mxu1 }
 0x24c   : > { %v1318_v21 = vadd.f32 %v1238_v39, %v1006_v57  ;;  %v1327_v9 = vadd.f32 %v1275_v51, %v1041_v1  ;;  %v2598_v39 = vld [vmem:[#allocation8_spill] sm:$0xff] }
 0x24d   : > { %v1464_v19 = vmax.f32 %v1456_v23, 0.0 }
 0x24e   : > { %v1374_v41 = vrot.slane %v1318_v21, 1  ;;  %v1421_v30 = vrot.slane %v1327_v9, 2 }
 0x24f   : > { %v1472_v35 = vpack.c.bf16 %v1464_v19, %v1464_v19 }
 0x250   : > { %v1375_v52 = vsel %vm1351_vm9, %v1373_v53, %v1374_v41 }
 0x251   : > { %v1391_v16 = vadd.f32 %v1375_v52, %v2465_v3  ;;  %v1493_v11 = vunpack.c.l.b16 %v1472_v35  ;;  %v1046_v3 = vadd.f32 %v1045_v24, %v2594_v62  ;;  %v1052_v26 = vpop.f32.mrf.mxu2  ;;  %v2599_v24 = vld [vmem:[#allocation9_spill] sm:$0xff] }
 0x252   : > { %v1053_v48 = vadd.f32 %v1052_v26, %v2596_v2 }
 0x253   : > { %v1277_v55 = vpop.f32.mrf.mxu1  ;;  %v1499_v63 = vpack.c.b16 %v1493_v11, %v1492_v18 }
 0x254   : > { %v1328_v42 = vadd.f32 %v1277_v55, %v1043_v58 }
 0x255   : > { %1886 = vmatmul.msk.bf16.gmra.mxu2 %vm670_vm8, %v1499_v63 }
 0x256   : > { %v1422_v17 = vrot.slane %v1328_v42, 2 }
 0x258   : > { %v1423_v60 = vsel %vm1408_vm10, %v1421_v30, %v1422_v17  ;;  %v1567_v17 = vpop.f32.mrf.mxu3 }
 0x259   : > { %v1445_v34 = vadd.f32 %v1423_v60, %v2477_v44  ;;  %v1055_v28 = vpop.f32.mrf.mxu2 }
 0x25a   : > { %v1056_v51 = vadd.f32 %v1055_v28, %v2598_v39 }
 0x25b   : > { %v1280_v32 = vpop.f32.mrf.mxu1  ;;  %v1457_v20 = vadd.f32 %v2474_v40, %v1445_v34 }
 0x25c   : > { %v1329_v7 = vadd.f32 %v1280_v32, %v1046_v3  ;;  %v1944_v32 = vld [vmem:[%s2580_s8] ss:$0 sm:$0xff] }
 0x25d   : > { %v1465_v6 = vmax.f32 %v1457_v20, 0.0  ;;  %v1568_v30 = vadd.f32 %v1944_v32, %v1567_v17 }
 0x25e   : > { %v1424_v31 = vrot.slane %v1329_v7, 2 }
 0x25f   : > { %v1473_v43 = vpack.c.bf16 %v1465_v6, %v1465_v6 }
 0x260   : > { %v1569_v3 = vpop.f32.mrf.mxu3 }
 0x261   : > { %v1494_v37 = vunpack.c.l.b16 %v1473_v43  ;;  %v1057_v23 = vpop.f32.mrf.mxu2  ;;  %v1570_v4 = vadd.f32 %v1944_v32, %v1569_v3 }
 0x262   : > { %v1058_v56 = vadd.f32 %v1057_v23, %v2599_v24 }
 0x263   : > { %v1282_v50 = vpop.f32.mrf.mxu1 }
 0x264   : > { %v1330_v25 = vadd.f32 %v1282_v50, %v1048_v13 }
 0x266   : > { %v1425_v22 = vrot.slane %v1330_v25, 2 }
 0x268   : > { %v1426_v49 = vsel %vm1408_vm10, %v1424_v31, %v1425_v22  ;;  %v1572_v31 = vpop.f32.mrf.mxu3 }
 0x269   : > { %v1446_v29 = vadd.f32 %v1426_v49, %v2490_v12  ;;  %v1573_v22 = vadd.f32 %v1944_v32, %v1572_v31 }
 0x26b   : > { %v1458_v45 = vadd.f32 %v2474_v40, %v1446_v29  ;;  %v1285_v15 = vpop.f32.mrf.mxu1 }
 0x26c   : > { %v1331_v12 = vadd.f32 %v1285_v15, %v1051_v54 }
 0x26d   : > { %v1466_v44 = vmax.f32 %v1458_v45, 0.0 }
 0x26e   : > { %v1427_v57 = vrot.slane %v1331_v12, 2 }
 0x26f   : > { %v1474_v14 = vpack.c.bf16 %v1466_v44, %v1466_v44 }
 0x270   : > { %v1574_v26 = vpop.f32.mrf.mxu3 }
 0x271   : > { %v1495_v46 = vunpack.c.l.b16 %v1474_v14  ;;  %v1575_v43 = vadd.f32 %v1944_v32, %v1574_v26 }
 0x273   : > { %v1287_v36 = vpop.f32.mrf.mxu1  ;;  %v1500_v10 = vpack.c.b16 %v1495_v46, %v1494_v37 }
 0x274   : > { %v1332_v38 = vadd.f32 %v1287_v36, %v1053_v48 }
 0x275   : > { %1887 = vmatmul.msk.bf16.gmra.mxu2 %vm670_vm8, %v1500_v10 }
 0x276   : > { %v1428_v27 = vrot.slane %v1332_v38, 2 }
 0x278   : > { %v1429_v5 = vsel %vm1408_vm10, %v1427_v57, %v1428_v27  ;;  %v1577_v10 = vpop.f32.mrf.mxu3 }
 0x279   : > { %v1447_v21 = vadd.f32 %v1429_v5, %v2505_v61  ;;  %v1578_v2 = vadd.f32 %v1944_v32, %v1577_v10 }
 0x27b   : > { %v1290_v47 = vpop.f32.mrf.mxu1  ;;  %v1459_v35 = vadd.f32 %v2474_v40, %v1447_v21 }
 0x27c   : > { %v1333_v19 = vadd.f32 %v1290_v47, %v1056_v51 }
 0x27d   : > { %v1467_v55 = vmax.f32 %v1459_v35, 0.0 }
 0x27e   : > { %v1430_v52 = vrot.slane %v1333_v19, 2 }
 0x27f   : > { %v1475_v59 = vpack.c.bf16 %v1467_v55, %v1467_v55 }
 0x280   : > { %v1579_v54 = vpop.f32.mrf.mxu3 }
 0x281   : > { %v1496_v61 = vunpack.c.l.b16 %v1475_v59  ;;  %v1580_v27 = vadd.f32 %v1944_v32, %v1579_v54 }
 0x283   : > { %v1292_v53 = vpop.f32.mrf.mxu1 }
 0x284   : > { %v1334_v41 = vadd.f32 %v1292_v53, %v1058_v56 }
 0x286   : > { %v1431_v18 = vrot.slane %v1334_v41, 2 }
 0x288   : > { %v1432_v11 = vsel %vm1408_vm10, %v1430_v52, %v1431_v18  ;;  %v1582_v51 = vpop.f32.mrf.mxu3 }
 0x289   : > { %v1448_v63 = vadd.f32 %v1432_v11, %v1391_v16  ;;  %v1943_v16 = vld [vmem:[%s2578_s6] ss:$0 sm:$0xff]  ;;  %v1583_v21 = vadd.f32 %v1944_v32, %v1582_v51 }
 0x28b   : > { %v1460_v58 = vadd.f32 %v2474_v40, %v1448_v63 }
 0x28d   : > { %v1468_v1 = vmax.f32 %v1460_v58, 0.0 }
 0x28f   : > { %v1476_v42 = vpack.c.bf16 %v1468_v1, %v1468_v1 }
 0x290   : > { %v1584_v41 = vpop.f32.mrf.mxu3 }
 0x291   : > { %v1497_v8 = vunpack.c.l.b16 %v1476_v42  ;;  %v1585_v18 = vadd.f32 %v1944_v32, %v1584_v41 }
 0x293   : > { %v1501_v9 = vpack.c.b16 %v1497_v8, %v1496_v61 }
 0x295   : > { %1888 = vmatmul.msk.bf16.gmra.mxu2 %vm670_vm8, %v1501_v9 }
 0x2b8   : > { %v1526_v40 = vpop.f32.mrf.mxu2 }
 0x2b9   : > { %v1527_v60 = vadd.f32 %v1943_v16, %v1526_v40 }
 0x2bb   : > { %v1587_v62 = vadd.f32 %v1568_v30, %v1527_v60 }
 0x2bd   : > { %v1595_v33 = vmax.f32 %v1587_v62, 0.0 }
 0x2bf   : > { %v1603_v34 = vpack.c.bf16 %v1595_v33, %v1595_v33 }
 0x2c0   : > { %v1528_v13 = vpop.f32.mrf.mxu2 }
 0x2c1   : > { %1612 = vst.msk [vmem:[%s2551_s12] sm:$0xf] %vm1611_vm11, %v1603_v34  ;;  %v1529_v7 = vadd.f32 %v1943_v16, %v1528_v13 }
 0x2c3   : > { %v1588_v50 = vadd.f32 %v1570_v4, %v1529_v7 }
 0x2c5   : > { %v1596_v25 = vmax.f32 %v1588_v50, 0.0 }
 0x2c7   : > { %v1604_v20 = vpack.c.bf16 %v1596_v25, %v1596_v25 }
 0x2c9   : > { %1613 = vst.msk [vmem:[%s2551_s12 + $0x4] sm:$0xf] %vm1611_vm11, %v1604_v20 }
 0x2d8   : > { %v1531_v49 = vpop.f32.mrf.mxu2 }
 0x2d9   : > { %v1532_v6 = vadd.f32 %v1943_v16, %v1531_v49 }
 0x2db   : > { %v1589_v29 = vadd.f32 %v1573_v22, %v1532_v6 }
 0x2dd   : > { %v1597_v45 = vmax.f32 %v1589_v29, 0.0 }
 0x2df   : > { %v1605_v15 = vpack.c.bf16 %v1597_v45, %v1597_v45 }
 0x2e0   : > { %v1533_v44 = vpop.f32.mrf.mxu2 }
 0x2e1   : > { %1614 = vst.msk [vmem:[%s2551_s12 + $0x8] sm:$0xf] %vm1611_vm11, %v1605_v15  ;;  %v1534_v14 = vadd.f32 %v1943_v16, %v1533_v44 }
 0x2e3   : > { %v1590_v37 = vadd.f32 %v1575_v43, %v1534_v14 }
 0x2e5   : > { %v1598_v46 = vmax.f32 %v1590_v37, 0.0 }
 0x2e7   : > { %v1606_v36 = vpack.c.bf16 %v1598_v46, %v1598_v46 }
 0x2e9   : > { %1615 = vst.msk [vmem:[%s2551_s12 + $0xc] sm:$0xf] %vm1611_vm11, %v1606_v36 }
 0x2f8   : > { %v1536_v48 = vpop.f32.mrf.mxu2 }
 0x2f9   : > { %v1537_v28 = vadd.f32 %v1943_v16, %v1536_v48 }
 0x2fb   : > { %v1591_v0 = vadd.f32 %v1578_v2, %v1537_v28 }
 0x2fd   : > { %v1599_v38 = vmax.f32 %v1591_v0, 0.0 }
 0x2ff   : > { %v1607_v12 = vpack.c.bf16 %v1599_v38, %v1599_v38 }
 0x300   : > { %v1538_v47 = vpop.f32.mrf.mxu2 }
 0x301   : > { %1616 = vst.msk [vmem:[%s2551_s12 + $0x10] sm:$0xf] %vm1611_vm11, %v1607_v12  ;;  %v1539_v57 = vadd.f32 %v1943_v16, %v1538_v47 }
 0x303   : > { %v1592_v5 = vadd.f32 %v1580_v27, %v1539_v57 }
 0x305   : > { %v1600_v23 = vmax.f32 %v1592_v5, 0.0 }
 0x307   : > { %v1608_v39 = vpack.c.bf16 %v1600_v23, %v1600_v23 }
 0x309   : > { %1617 = vst.msk [vmem:[%s2551_s12 + $0x14] sm:$0xf] %vm1611_vm11, %v1608_v39 }
 0x318   : > { %v1541_v24 = vpop.f32.mrf.mxu2 }
 0x319   : > { %v1542_v56 = vadd.f32 %v1943_v16, %v1541_v24 }
 0x31b   : > { %v1593_v19 = vadd.f32 %v1583_v21, %v1542_v56 }
 0x31d   : > { %v1601_v53 = vmax.f32 %v1593_v19, 0.0 }
 0x31f   : > { %v1609_v35 = vpack.c.bf16 %v1601_v53, %v1601_v53 }
 0x320   : > { %v1543_v52 = vpop.f32.mrf.mxu2 }
 0x321   : > { %1618 = vst.msk [vmem:[%s2551_s12 + $0x18] sm:$0xf] %vm1611_vm11, %v1609_v35  ;;  %v1544_v11 = vadd.f32 %v1943_v16, %v1543_v52 }
 0x323   : > { %v1594_v55 = vadd.f32 %v1585_v18, %v1544_v11 }
 0x325   : > { %v1602_v63 = vmax.f32 %v1594_v55, 0.0 }
 0x327   : > { %v1610_v58 = vpack.c.bf16 %v1602_v63, %v1602_v63 }
 0x329   : > { %1619 = vst.msk [vmem:[%s2551_s12 + $0x1c] sm:$0xf] %vm1611_vm11, %v1610_v58 }
 0x32a PF: > { %s19_s30 = sadd.s32 1, %s1951_s30  }
 0x32b   : > { %p16_p4 = scmp.ge.s32.totalorder %s19_s30, 4  }
 0x32d   :  { %18 = sbr.rel (!%p16_p4) target bundleno = 1 (0x1), region = 96 }

</bundles_post_ra>
